<compile_context>
chip_gen: v6e
topology: v6e:2x2x1
jax: 0.10.0
libtpu: 0.0.40
codegen_flags: <defaults>
</compile_context>

<pallas_src>
import math

import numpy as np
import jax
import jax.numpy as jnp
from jax.experimental import pallas as pl
from jax.experimental.pallas import tpu as pltpu


def _round_up(x: int, m: int) -> int:
    return ((x + m - 1) // m) * m


def _make_grid_constants(window_size: int) -> np.ndarray:
    """(4, WW) rows = gx, gy, gx^2, gy^2 of the normalised meshgrid.

    Matches kornia.create_meshgrid(W, W, normalized_coordinates=True) flattened
    row-major (r = y * W + x): x varies fastest.
    """
    W = window_size
    if W > 1:
        xs = np.linspace(-1.0, 1.0, W, dtype=np.float32)
    else:
        xs = np.asarray([-1.0], dtype=np.float32)
    gx, gy = np.meshgrid(xs, xs, indexing="xy")        # gx varies along x
    gx = gx.reshape(-1)
    gy = gy.reshape(-1)
    return np.stack([gx, gy, gx * gx, gy * gy], axis=0).astype(np.float32)


def _make_fine_matching_kernel(return_std: bool):
    def kernel(consts_ref, f1mid_ref, f2_ref, out_ref):
        # consts_ref: (4, WW)     rows: gx, gy, gx^2, gy^2 (normalised grid)
        # f1mid_ref:  (TM, C)     centre-pixel features of image-1 windows
        # f2_ref:     (TM, WW, C) image-2 window features
        # out_ref:    (D, TM)     lane-dense output rows (x, y[, std])
        C = f2_ref.shape[2]

        f1_mid = f1mid_ref[...].astype(jnp.float32)        # (TM, C)
        f2 = f2_ref[...].astype(jnp.float32)               # (TM, WW, C)

        # sim[m, r] = sum_c f1_mid[m, c] * f2[m, r, c] (explicit VPU form; the
        # per-match matmul is far too small for the MXU and the kernel is
        # memory-bound anyway).
        sim = jnp.sum(f2 * f1_mid[:, None, :], axis=-1)    # (TM, WW)
        logits = sim * (1.0 / math.sqrt(C))

        # Numerically-stable softmax over the window axis; keep it
        # unnormalised and fold 1/denom into the reduced expectations.
        logits = logits - jnp.max(logits, axis=1, keepdims=True)
        e = jnp.exp(logits)                                # (TM, WW)
        inv_denom = pl.reciprocal(jnp.sum(e, axis=1), approx=True)   # (TM,)

        gx = consts_ref[0:1, :]                            # (1, WW)
        gy = consts_ref[1:2, :]                            # (1, WW)

        ex = jnp.sum(e * gx, axis=1) * inv_denom           # (TM,)
        ey = jnp.sum(e * gy, axis=1) * inv_denom           # (TM,)

        out_ref[0, :] = ex.astype(out_ref.dtype)
        out_ref[1, :] = ey.astype(out_ref.dtype)

        if return_std:
            gx2 = consts_ref[2:3, :]
            gy2 = consts_ref[3:4, :]
            exx = jnp.sum(e * gx2, axis=1) * inv_denom
            eyy = jnp.sum(e * gy2, axis=1) * inv_denom
            var_x = jnp.maximum(exx - ex * ex, 1e-10)
            var_y = jnp.maximum(eyy - ey * ey, 1e-10)
            std = jnp.sqrt(var_x) + jnp.sqrt(var_y)
            out_ref[2, :] = std.astype(out_ref.dtype)

    return kernel


def fine_matching(fine_feat_1, fine_feat_2, *, return_standard_deviation=False,
                  tm=512):
    """Pallas implementation of FineMatching.forward.

    fine_feat_1, fine_feat_2: [M, WW, C] (float32 or bfloat16)
    Returns float32 [M, 2] (or [M, 3] if return_standard_deviation).
    """
    M, WW, C = fine_feat_1.shape
    D = 3 if return_standard_deviation else 2
    if M == 0:
        # PyTorch returns None; return an empty array so the op stays usable
        # under jit.
        return jnp.zeros((0, D), jnp.float32)
    W = int(math.isqrt(WW))
    assert W * W == WW, "window_size_squared must be a perfect square"

    # Only the centre pixel of image-1 windows is ever used: slice it here so
    # the kernel streams [M, C] instead of the full [M, WW, C].
    f1_mid = fine_feat_1[:, WW // 2, :]                    # (M, C)

    # Normalised meshgrid constants, passed as a (tiny) kernel input.
    grid_consts = jnp.asarray(_make_grid_constants(W))     # (4, WW)

    # Choose the M-tile: large (amortise per-step overhead), a multiple of 128
    # (so the lane-dense (D, tm) output block stores unmasked), and pad M up
    # to a tile multiple (padded rows give finite garbage, sliced off below).
    if M > tm:
        tm_eff = _round_up(tm, 128)
    elif M >= 256:
        # Small-but-nontrivial problem: use (at least) two grid steps so a
        # two-TensorCore chip (v7x) can shard the "parallel" grid axis.
        tm_eff = _round_up((M + 1) // 2, 128)
    else:
        tm_eff = M      # single block == full array; no (8,128) constraint
    M_pad = _round_up(M, tm_eff)

    if M_pad != M:
        pad = M_pad - M
        f1_mid = jnp.pad(f1_mid, ((0, pad), (0, 0)))
        fine_feat_2 = jnp.pad(fine_feat_2, ((0, pad), (0, 0), (0, 0)))

    kernel = _make_fine_matching_kernel(return_standard_deviation)

    out_t = pl.pallas_call(
        kernel,
        out_shape=jax.ShapeDtypeStruct((D, M_pad), jnp.float32),
        grid_spec=pltpu.PrefetchScalarGridSpec(
            num_scalar_prefetch=0,
            grid=(M_pad // tm_eff,),
            in_specs=[
                pl.BlockSpec((4, WW), lambda i: (0, 0)),          # constants
                pl.BlockSpec((tm_eff, C), lambda i: (i, 0)),      # f1 centre
                pl.BlockSpec((tm_eff, WW, C), lambda i: (i, 0, 0)),  # f2
            ],
            out_specs=pl.BlockSpec((D, tm_eff), lambda i: (0, i)),
        ),
        compiler_params=pltpu.CompilerParams(
            dimension_semantics=("parallel",),
            # (tm, WW, C) f32 blocks pad in VMEM (WW->32 sublanes, C->128
            # lanes): ~16 KiB/match, ~16 MiB double-buffered at tm=512.
            # 40 MiB gives headroom on every generation (v7x: 64 MiB physical).
            vmem_limit_bytes=40 * 1024 * 1024,
        ),
    )(grid_consts, f1_mid, fine_feat_2)

    # Tiny [D, M_pad] -> [M, D] transpose + drop the padded rows.
    return out_t[:, :M].T


def _reference_fine_matching(f1, f2, return_standard_deviation=False):
    """Pure-JAX reference (mirrors the PyTorch + kornia math)."""
    M, WW, C = f1.shape
    W = int(math.isqrt(WW))
    f1_mid = f1[:, WW // 2, :]
    sim = jnp.einsum('mc,mrc->mr', f1_mid, f2)
    heat = jax.nn.softmax(sim / math.sqrt(C), axis=1)
    xs = jnp.linspace(-1.0, 1.0, W)
    gx, gy = jnp.meshgrid(xs, xs, indexing='xy')           # x varies along W
    gx = gx.reshape(-1)
    gy = gy.reshape(-1)
    ex = jnp.sum(heat * gx[None, :], axis=1)
    ey = jnp.sum(heat * gy[None, :], axis=1)
    pred = jnp.stack([ex, ey], axis=1)
    if not return_standard_deviation:
        return pred
    grid = jnp.stack([gx, gy], axis=1)[None]               # (1, WW, 2)
    var = jnp.sum(grid ** 2 * heat[:, :, None], axis=1) - pred ** 2
    std = jnp.sum(jnp.sqrt(jnp.maximum(var, 1e-10)), axis=-1)
    return jnp.concatenate([pred, std[:, None]], axis=-1)


if __name__ == "__main__":
    key = jax.random.PRNGKey(0)
    k1, k2 = jax.random.split(key)

    # number_of_matches=16, window_size=5 (WW=25), fine_feature_size=32
    M, W, C = 16, 5, 32
    WW = W * W
    f1 = jax.random.normal(k1, (M, WW, C), dtype=jnp.float32)
    f2 = jax.random.normal(k2, (M, WW, C), dtype=jnp.float32)

    # Default path (return_standard_deviation=False) -> [M, 2]
    out = fine_matching(f1, f2, return_standard_deviation=False)
    out = jax.block_until_ready(out)
    ref = _reference_fine_matching(f1, f2, return_standard_deviation=False)
    assert out.shape == (M, 2)
    assert jnp.allclose(out, ref, atol=2e-3, rtol=2e-3), \
        float(jnp.max(jnp.abs(out - ref)))

    # Standard-deviation path -> [M, 3]
    out_std = fine_matching(f1, f2, return_standard_deviation=True)
    out_std = jax.block_until_ready(out_std)
    ref_std = _reference_fine_matching(f1, f2, return_standard_deviation=True)
    assert out_std.shape == (M, 3)
    assert jnp.allclose(out_std, ref_std, atol=2e-3, rtol=2e-3), \
        float(jnp.max(jnp.abs(out_std - ref_std)))

    print("KERNEL_OK")
</pallas_src>

<mosaic_0001>
module attributes {stable_mosaic.version = 11 : i64} {
  func.func @kernel(%arg0: i32, %arg1: memref<4x25xf32, #tpu.memory_space<vmem>>, %arg2: memref<16x32xf32, #tpu.memory_space<vmem>>, %arg3: memref<16x25x32xf32, #tpu.memory_space<vmem>>, %arg4: memref<2x16xf32, #tpu.memory_space<vmem>>) attributes {dimension_semantics = [#tpu.dimension_semantics<parallel>], iteration_bounds = array<i64: 1>, scalar_prefetch = 0 : i64, scratch_operands = 0 : i64, tpu.core_type = #tpu.core_type<tc>, window_params = [{pipeline_mode = #tpu.pipeline_mode<synchronous>, transform_indices = @transform_0, window_bounds = array<i64: 4, 25>}, {transform_indices = @transform_1, window_bounds = array<i64: 16, 32>}, {transform_indices = @transform_2, window_bounds = array<i64: 16, 25, 32>}, {transform_indices = @transform_3, window_bounds = array<i64: 2, 16>}]} {
    %c0 = arith.constant 0 : index
    %c0_0 = arith.constant 0 : index
    %0 = vector.load %arg2[%c0, %c0_0] : memref<16x32xf32, #tpu.memory_space<vmem>>, vector<16x32xf32>
    %c0_1 = arith.constant 0 : index
    %c0_2 = arith.constant 0 : index
    %c0_3 = arith.constant 0 : index
    %1 = vector.load %arg3[%c0_1, %c0_2, %c0_3] : memref<16x25x32xf32, #tpu.memory_space<vmem>>, vector<16x25x32xf32>
    %2 = vector.shape_cast %0 : vector<16x32xf32> to vector<16x1x32xf32>
    %3 = vector.broadcast %2 : vector<16x1x32xf32> to vector<16x25x32xf32>
    %4 = arith.mulf %1, %3 : vector<16x25x32xf32>
    %cst = arith.constant dense<0.000000e+00> : vector<16x25xf32>
    %5 = vector.multi_reduction <add>, %4, %cst [2] : vector<16x25x32xf32> to vector<16x25xf32>
    %cst_4 = arith.constant 0.176776692 : f32
    %6 = vector.broadcast %cst_4 : f32 to vector<16x25xf32>
    %7 = arith.mulf %5, %6 : vector<16x25xf32>
    %cst_5 = arith.constant dense<0xFF800000> : vector<16xf32>
    %8 = vector.multi_reduction <maximumf>, %7, %cst_5 [1] : vector<16x25xf32> to vector<16xf32>
    %9 = vector.shape_cast %8 : vector<16xf32> to vector<16x1xf32>
    %10 = vector.broadcast %9 : vector<16x1xf32> to vector<16x25xf32>
    %11 = arith.subf %7, %10 : vector<16x25xf32>
    %12 = math.exp %11 : vector<16x25xf32>
    %cst_6 = arith.constant dense<0.000000e+00> : vector<16xf32>
    %13 = vector.multi_reduction <add>, %12, %cst_6 [1] : vector<16x25xf32> to vector<16xf32>
    %14 = tpu.reciprocal %13 {approx = true} : vector<16xf32> -> vector<16xf32>
    %c0_7 = arith.constant 0 : index
    %c0_8 = arith.constant 0 : index
    %15 = vector.load %arg1[%c0_7, %c0_8] : memref<4x25xf32, #tpu.memory_space<vmem>>, vector<1x25xf32>
    %c1 = arith.constant 1 : index
    %c0_9 = arith.constant 0 : index
    %16 = vector.load %arg1[%c1, %c0_9] : memref<4x25xf32, #tpu.memory_space<vmem>>, vector<1x25xf32>
    %17 = vector.broadcast %15 : vector<1x25xf32> to vector<16x25xf32>
    %18 = arith.mulf %12, %17 : vector<16x25xf32>
    %cst_10 = arith.constant dense<0.000000e+00> : vector<16xf32>
    %19 = vector.multi_reduction <add>, %18, %cst_10 [1] : vector<16x25xf32> to vector<16xf32>
    %20 = arith.mulf %19, %14 : vector<16xf32>
    %21 = vector.broadcast %16 : vector<1x25xf32> to vector<16x25xf32>
    %22 = arith.mulf %12, %21 : vector<16x25xf32>
    %cst_11 = arith.constant dense<0.000000e+00> : vector<16xf32>
    %23 = vector.multi_reduction <add>, %22, %cst_11 [1] : vector<16x25xf32> to vector<16xf32>
    %24 = arith.mulf %23, %14 : vector<16xf32>
    %c0_12 = arith.constant 0 : index
    %c0_13 = arith.constant 0 : index
    %25 = vector.load %arg4[%c0_12, %c0_13] : memref<2x16xf32, #tpu.memory_space<vmem>>, vector<1x16xf32>
    %26 = vector.shape_cast %25 : vector<1x16xf32> to vector<16xf32>
    %27 = vector.shape_cast %20 : vector<16xf32> to vector<1x16xf32>
    tpu.vector_store %arg4[%c0_12, %c0_13], %27 {strides = array<i32>} : memref<2x16xf32, #tpu.memory_space<vmem>>, vector<1x16xf32>,
    %c1_14 = arith.constant 1 : index
    %c0_15 = arith.constant 0 : index
    %28 = vector.load %arg4[%c1_14, %c0_15] : memref<2x16xf32, #tpu.memory_space<vmem>>, vector<1x16xf32>
    %29 = vector.shape_cast %28 : vector<1x16xf32> to vector<16xf32>
    %30 = vector.shape_cast %24 : vector<16xf32> to vector<1x16xf32>
    tpu.vector_store %arg4[%c1_14, %c0_15], %30 {strides = array<i32>} : memref<2x16xf32, #tpu.memory_space<vmem>>, vector<1x16xf32>,
    return
  }
  func.func @transform_0(%arg0: i32) -> (i32, i32) {
    %c0_i32 = arith.constant 0 : i32
    %c0_i32_0 = arith.constant 0 : i32
    %c0_i32_1 = arith.constant 0 : i32
    return %c0_i32, %c0_i32_0 : i32, i32
  }
  func.func @transform_1(%arg0: i32) -> (i32, i32) {
    %c0_i32 = arith.constant 0 : i32
    %c0_i32_0 = arith.constant 0 : i32
    return %arg0, %c0_i32 : i32, i32
  }
  func.func @transform_2(%arg0: i32) -> (i32, i32, i32) {
    %c0_i32 = arith.constant 0 : i32
    %c0_i32_0 = arith.constant 0 : i32
    %c0_i32_1 = arith.constant 0 : i32
    return %arg0, %c0_i32, %c0_i32_0 : i32, i32, i32
  }
  func.func @transform_3(%arg0: i32) -> (i32, i32) {
    %c0_i32 = arith.constant 0 : i32
    %c0_i32_0 = arith.constant 0 : i32
    return %c0_i32, %arg0 : i32, i32
  }
}

</mosaic_0001>

<bundles_post_ra>
// kernel: tpu_custom_call.1
= control target key start
LH: loop header
LB: loop body
LE: loop exit
PB: predicated region body
PF: predicated region fallthrough
CT: control target
= control target key end

     0   :  { %v87_v0 = vlaneseq  ;;  %v3397_v1 = vmov 1966171168   ;;  %vm325_vm0 = vcmask 261120   ;;  %vm335_vm1 = vcmask 253952   ;;  %s5540_s0 = inlined_call_operand.vmem [shape: f32[4,25], index: 0, kind: input, shape index: {}]   ;;  %s5541_s1 = inlined_call_operand.vmem [shape: f32[16,32], index: 1, kind: input, shape index: {}]   ;;  %s5542_s2 = inlined_call_operand.vmem [shape: f32[16,25,32], index: 2, kind: input, shape index: {}]   ;;  %s5543_s3 = inlined_call_operand.hbm [shape: f32[2,16], index: 3, kind: output, shape index: {}]  }
   0x1   :  { %v85_v2 = vunpack.c.l.s4 %v3397_v1  ;;  %v15_v5 = vld [vmem:[%s5541_s1] sm:$0xff]  ;;  %v19_v10 = vld [vmem:[%s5542_s2 + $0x10] sm:$0xff]  ;;  %v20_v14 = vld [vmem:[%s5542_s2 + $0x18] sm:$0x1] }
   0x2   :  { %v3421_v3 = vshrl.u32 %v87_v0, 7  ;;  %v83_v9 = vcombine.high %v15_v5, %v15_v5  ;;  %v17_v13 = vld [vmem:[%s5542_s2] sm:$0xff]  ;;  %v18_v15 = vld [vmem:[%s5542_s2 + $0x8] sm:$0xff]  ;;  %v24_v34 = vld [vmem:[%s5542_s2 + $0x38] sm:$0x1] }
   0x3   :  { %v86_v4 = vunpack.c.0.s8 %v85_v2  ;;  %v22_v23 = vld [vmem:[%s5542_s2 + $0x28] sm:$0xff]  ;;  %v21_v25 = vld [vmem:[%s5542_s2 + $0x20] sm:$0xff]  ;;  %v23_v35 = vld [vmem:[%s5542_s2 + $0x30] sm:$0xff] }
   0x4   :  { %v3431_v8 = vsub.s32 0, %v3421_v3  ;;  %v26_v43 = vld [vmem:[%s5542_s2 + $0x48] sm:$0xff]  ;;  %v25_v44 = vld [vmem:[%s5542_s2 + $0x40] sm:$0xff]  ;;  %v28_v46 = vld [vmem:[%s5542_s2 + $0x58] sm:$0x1] }
   0x5   :  { %v3427_v6 = vsub.s32 %v86_v4, %v3421_v3  ;;  %v34_v45 = vld [vmem:[%s5542_s2 + $0x88] sm:$0xff]  ;;  %v27_v47 = vld [vmem:[%s5542_s2 + $0x50] sm:$0xff] }
   0x6   :  { %v16_v50 = vld [vmem:[%s5541_s1 + $0x8] sm:$0xff] }
   0x7   :  { %v90_v7 = vrot.slane %v15_v5, %v3427_v6  ;;  %v97_v18 = vrot.slane %v83_v9, %v3427_v6  ;;  %v30_v53 = vld [vmem:[%s5542_s2 + $0x68] sm:$0xff] }
   0x9   :  { %v106_v11 = vrot.slane %v90_v7, %v3427_v6  ;;  %v98_v12 = vcombine.high %v90_v7, %v90_v7  ;;  %v3459_v29 = vrot.slane %v97_v18, %v3427_v6  ;;  %v99_v49 = vcombine.high %v97_v18, %v97_v18 }
   0xb   :  { %v184_v16 = vrot.slane %v106_v11, %v3431_v8  ;;  %v120_v17 = vrot.slane %v98_v12, %v3427_v6  ;;  %v128_v28 = vcombine.high %v106_v11, %v106_v11  ;;  %v200_v38 = vrot.slane %v3459_v29, %v3431_v8 }
   0xd   :  { %v263_v19 = vmul.f32 %v184_v16, %v19_v10  ;;  %v261_v20 = vmul.f32 %v184_v16, %v17_v13  ;;  %v264_v21 = vmul.f32 %v184_v16, %v20_v14  ;;  %v262_v22 = vmul.f32 %v184_v16, %v18_v15 }
   0xe   :  { %v188_v24 = vrot.slane %v120_v17, %v3431_v8  ;;  %v130_v36 = vcombine.high %v120_v17, %v120_v17  ;;  %v192_v37 = vrot.slane %v128_v28, %v3431_v8  ;;  %v278_v54 = vmul.f32 %v200_v38, %v34_v45 }
   0xf   :  { %v332_v26 = vsel %vm325_vm0, %v263_v19, 0.0  ;;  %v326_v27 = vsel %vm325_vm0, %v261_v20, 0.0  ;;  %v336_v30 = vsel %vm335_vm1, %v264_v21, 0.0  ;;  %v329_v31 = vsel %vm325_vm0, %v262_v22, 0.0 }
  0x10   :  { %333 = vadd.xlane.f32.xlu1 %v332_v26  ;;  %327 = vadd.xlane.f32.xlu0 %v326_v27  ;;  %v266_v32 = vmul.f32 %v188_v24, %v22_v23  ;;  %v265_v33 = vmul.f32 %v188_v24, %v21_v25  ;;  %v268_v41 = vmul.f32 %v188_v24, %v24_v34 }
  0x11   :  { %v267_v42 = vmul.f32 %v188_v24, %v23_v35  ;;  %v196_v48 = vrot.slane %v130_v36, %v3431_v8  ;;  %v270_v51 = vmul.f32 %v192_v37, %v26_v43  ;;  %v269_v52 = vmul.f32 %v192_v37, %v25_v44 }
  0x12   :  { %v342_v39 = vsel %vm325_vm0, %v266_v32, 0.0  ;;  %v339_v40 = vsel %vm325_vm0, %v265_v33, 0.0 }
  0x14   :  { %337 = vadd.xlane.f32.xlu1 %v336_v30  ;;  %330 = vadd.xlane.f32.xlu0 %v329_v31 }
  0x18   :  { %343 = vadd.xlane.f32.xlu1 %v342_v39  ;;  %340 = vadd.xlane.f32.xlu0 %v339_v40 }
  0x19   :  { %8 = vsyncpa [#allocation3], 0  ;;  %v348_v55 = vsel %vm335_vm1, %v268_v41, 0.0  ;;  %v345_v56 = vsel %vm325_vm0, %v267_v42, 0.0  ;;  %v272_v57 = vmul.f32 %v192_v37, %v28_v46  ;;  %v271_v58 = vmul.f32 %v192_v37, %v27_v47  ;;  %v29_v59 = vld [vmem:[%s5542_s2 + $0x60] sm:$0xff]  ;;  %v31_v61 = vld [vmem:[%s5542_s2 + $0x70] sm:$0xff] }
  0x1a   :  { %v32_v60 = vld [vmem:[%s5542_s2 + $0x78] sm:$0x1]  ;;  %v139_v62 = vrot.slane %v16_v50, %v3427_v6  ;;  %v132_v63 = vcombine.high %v16_v50, %v16_v50  ;;  %v274_v1 = vmul.f32 %v196_v48, %v30_v53  ;;  %v33_v2 = vld [vmem:[%s5542_s2 + $0x80] sm:$0xff]  ;;  %v3512_v4 = vrot.slane %v99_v49, %v3427_v6  ;;  %v35_v12 = vld [vmem:[%s5542_s2 + $0x90] sm:$0xff] }
  0x1b   :  { %v354_v5 = vsel %vm325_vm0, %v270_v51, 0.0  ;;  %v351_v7 = vsel %vm325_vm0, %v269_v52, 0.0  ;;  %v273_v9 = vmul.f32 %v196_v48, %v29_v59  ;;  %v3517_v10 = vsel %vm325_vm0, %v278_v54, 0.0  ;;  %v36_v11 = vld [vmem:[%s5542_s2 + $0x98] sm:$0x1]  ;;  %v49_v18 = vld [vmem:[%s5542_s2 + $0x100] sm:$0xff] }
  0x1c   :  { %349 = vadd.xlane.f32.xlu1 %v348_v55  ;;  %346 = vadd.xlane.f32.xlu0 %v345_v56  ;;  %v360_v13 = vsel %vm335_vm1, %v272_v57, 0.0  ;;  %v357_v14 = vsel %vm325_vm0, %v271_v58, 0.0  ;;  %v276_v15 = vmul.f32 %v196_v48, %v32_v60  ;;  %v275_v16 = vmul.f32 %v196_v48, %v31_v61  ;;  %v50_v26 = vld [vmem:[%s5542_s2 + $0x108] sm:$0xff]  ;;  %v51_v27 = vld [vmem:[%s5542_s2 + $0x110] sm:$0xff]  ;;  %v52_v28 = vld [vmem:[%s5542_s2 + $0x118] sm:$0x1] }
  0x1d   :  { %v3527_v17 = vmul.f32 %v200_v38, %v33_v2  ;;  %v155_v19 = vrot.slane %v139_v62, %v3427_v6  ;;  %v147_v20 = vcombine.high %v139_v62, %v139_v62  ;;  %v3534_v21 = vrot.slane %v132_v63, %v3427_v6  ;;  %v53_v36 = vld [vmem:[%s5542_s2 + $0x120] sm:$0xff]  ;;  %v54_v37 = vld [vmem:[%s5542_s2 + $0x128] sm:$0xff]  ;;  %v55_v44 = vld [vmem:[%s5542_s2 + $0x130] sm:$0xff] }
  0x1e   :  { %v366_v22 = vsel %vm325_vm0, %v274_v1, 0.0  ;;  %v3537_v23 = vmul.f32 %v200_v38, %v36_v11  ;;  %v3539_v24 = vmul.f32 %v200_v38, %v35_v12  ;;  %v3543_v25 = vrot.slane %v3512_v4, %v3431_v8  ;;  %v56_v45 = vld [vmem:[%s5542_s2 + $0x138] sm:$0x1]  ;;  %v57_v46 = vld [vmem:[%s5542_s2 + $0x140] sm:$0xff]  ;;  %v58_v49 = vld [vmem:[%s5542_s2 + $0x148] sm:$0xff] }
  0x1f   :  { %v363_v30 = vsel %vm325_vm0, %v273_v9, 0.0  ;;  %v216_v31 = vrot.slane %v155_v19, %v3431_v8  ;;  %v169_v32 = vrot.slane %v147_v20, %v3427_v6  ;;  %v177_v33 = vcombine.high %v155_v19, %v155_v19  ;;  %v59_v50 = vld [vmem:[%s5542_s2 + $0x150] sm:$0xff]  ;;  %v60_v51 = vld [vmem:[%s5542_s2 + $0x158] sm:$0x1]  ;;  %v65_v11 = vld [vmem:[%s5542_s2 + $0x180] sm:$0xff] }
  0x20   :  { %355 = vadd.xlane.f32.xlu1 %v354_v5  ;;  %352 = vadd.xlane.f32.xlu0 %v351_v7  ;;  %v3558_v34 = vsel %vm335_vm1, %v276_v15, 0.0  ;;  %v3561_v35 = vsel %vm325_vm0, %v275_v16, 0.0  ;;  %v3571_v38 = vrot.slane %v3534_v21, %v3427_v6  ;;  %v148_v39 = vcombine.high %v3534_v21, %v3534_v21  ;;  %v61_v5 = vld [vmem:[%s5542_s2 + $0x160] sm:$0xff]  ;;  %v62_v7 = vld [vmem:[%s5542_s2 + $0x168] sm:$0xff]  ;;  %v63_v9 = vld [vmem:[%s5542_s2 + $0x170] sm:$0xff] }
  0x21   :  { %v293_v40 = vmul.f32 %v216_v31, %v49_v18  ;;  %v294_v41 = vmul.f32 %v216_v31, %v50_v26  ;;  %v295_v42 = vmul.f32 %v216_v31, %v51_v27  ;;  %v296_v43 = vmul.f32 %v216_v31, %v52_v28  ;;  %v66_v12 = vld [vmem:[%s5542_s2 + $0x188] sm:$0xff]  ;;  %v68_v19 = vld [vmem:[%s5542_s2 + $0x198] sm:$0x1] }
  0x22   :  { %v220_v47 = vrot.slane %v169_v32, %v3431_v8  ;;  %v224_v48 = vrot.slane %v177_v33, %v3431_v8  ;;  %v179_v52 = vcombine.high %v169_v32, %v169_v32  ;;  %v232_v53 = vrot.slane %v3571_v38, %v3431_v8  ;;  %v64_v28 = vld [vmem:[%s5542_s2 + $0x178] sm:$0x1] }
  0x23   :  { %v3598_v54 = vsel %vm325_vm0, %v293_v40, 0.0  ;;  %v3601_v55 = vsel %vm325_vm0, %v294_v41, 0.0  ;;  %v3604_v56 = vsel %vm325_vm0, %v295_v42, 0.0  ;;  %v3607_v57 = vsel %vm335_vm1, %v296_v43, 0.0  ;;  %v38_v41 = vld [vmem:[%s5542_s2 + $0xa8] sm:$0xff]  ;;  %v37_v42 = vld [vmem:[%s5542_s2 + $0xa0] sm:$0xff] }
  0x24   :  { %361 = vadd.xlane.f32.xlu1 %v360_v13  ;;  %358 = vadd.xlane.f32.xlu0 %v357_v14  ;;  %v297_v58 = vmul.f32 %v220_v47, %v53_v36  ;;  %v298_v59 = vmul.f32 %v220_v47, %v54_v37  ;;  %v299_v60 = vmul.f32 %v220_v47, %v55_v44  ;;  %v67_v13 = vld [vmem:[%s5542_s2 + $0x190] sm:$0xff]  ;;  %v375_v33 = vsel %vm325_vm0, %v3527_v17, 0.0  ;;  %v69_v17 = vld [vmem:[%s5542_s2 + $0x1a0] sm:$0xff] }
  0x25   :  { %v300_v61 = vmul.f32 %v220_v47, %v56_v45  ;;  %v301_v62 = vmul.f32 %v224_v48, %v57_v46  ;;  %v302_v63 = vmul.f32 %v224_v48, %v58_v49  ;;  %v303_v1 = vmul.f32 %v224_v48, %v59_v50 }
  0x26   :  { %v304_v2 = vmul.f32 %v224_v48, %v60_v51  ;;  %v3628_v14 = vsel %vm325_vm0, %v297_v58, 0.0  ;;  %v3631_v15 = vsel %vm325_vm0, %v298_v59, 0.0  ;;  %v3634_v16 = vsel %vm325_vm0, %v299_v60, 0.0  ;;  %v70_v48 = vld [vmem:[%s5542_s2 + $0x1a8] sm:$0xff]  ;;  %v73_v59 = vld [vmem:[%s5542_s2 + $0x1c0] sm:$0xff] }
  0x27   :  { %v3637_v18 = vsel %vm335_vm1, %v300_v61, 0.0  ;;  %v3643_v20 = vsel %vm325_vm0, %v301_v62, 0.0  ;;  %v3646_v21 = vsel %vm325_vm0, %v302_v63, 0.0  ;;  %v3649_v26 = vsel %vm325_vm0, %v303_v1, 0.0  ;;  %v74_v61 = vld [vmem:[%s5542_s2 + $0x1c8] sm:$0xff]  ;;  %v75_v62 = vld [vmem:[%s5542_s2 + $0x1d0] sm:$0xff] }
  0x28   :  { %367 = vadd.xlane.f32.xlu1 %v366_v22  ;;  %364 = vadd.xlane.f32.xlu0 %v363_v30  ;;  %v3652_v27 = vsel %vm335_vm1, %v304_v2, 0.0  ;;  %v228_v31 = vrot.slane %v179_v52, %v3431_v8  ;;  %v309_v22 = vmul.f32 %v232_v53, %v65_v11  ;;  %v310_v30 = vmul.f32 %v232_v53, %v66_v12  ;;  %v72_v52 = vld [vmem:[%s5542_s2 + $0x1b8] sm:$0x1] }
  0x29   :  { %v311_v32 = vmul.f32 %v232_v53, %v67_v13  ;;  %v312_v36 = vmul.f32 %v232_v53, %v68_v19  ;;  %v176_v37 = vrot.slane %v148_v39, %v3427_v6  ;;  %v178_v40 = vcombine.high %v3571_v38, %v3571_v38  ;;  %v76_v2 = vld [vmem:[%s5542_s2 + $0x1d8] sm:$0x1]  ;;  %v39_v13 = vld [vmem:[%s5542_s2 + $0xb0] sm:$0xff] }
  0x2a   :  { %v305_v43 = vmul.f32 %v228_v31, %v61_v5  ;;  %v306_v44 = vmul.f32 %v228_v31, %v62_v7  ;;  %v307_v45 = vmul.f32 %v228_v31, %v63_v9  ;;  %v308_v46 = vmul.f32 %v228_v31, %v64_v28 }
  0x2b   :  { %v3675_v6 = vsel %vm325_vm0, %v309_v22, 0.0  ;;  %v3678_v38 = vsel %vm325_vm0, %v310_v30, 0.0  ;;  %v3681_v39 = vsel %vm325_vm0, %v311_v32, 0.0  ;;  %v3684_v47 = vsel %vm335_vm1, %v312_v36, 0.0  ;;  %v78_v36 = vld [vmem:[%s5542_s2 + $0x1e8] sm:$0xff] }
  0x2c   :  { %373 = vadd.xlane.f32.xlu1 %v3558_v34  ;;  %370 = vadd.xlane.f32.xlu0 %v3561_v35  ;;  %v71_v34 = vld [vmem:[%s5542_s2 + $0x1b0] sm:$0xff]  ;;  %v3693_v35 = vsel %vm325_vm0, %v305_v43, 0.0  ;;  %v3696_v49 = vsel %vm325_vm0, %v306_v44, 0.0  ;;  %v3699_v50 = vsel %vm325_vm0, %v307_v45, 0.0  ;;  %v3702_v51 = vsel %vm335_vm1, %v308_v46, 0.0 }
  0x2d   :  { %v129_v53 = vcombine.high %v3459_v29, %v3459_v29  ;;  %v236_v58 = vrot.slane %v176_v37, %v3431_v8  ;;  %v240_v60 = vrot.slane %v178_v40, %v3431_v8  ;;  %v384_v63 = vsel %vm335_vm1, %v3537_v23, 0.0  ;;  %v40_v23 = vld [vmem:[%s5542_s2 + $0xb8] sm:$0x1] }
  0x2e   :  { %v282_v29 = vmul.f32 %v3543_v25, %v38_v41  ;;  %v281_v1 = vmul.f32 %v3543_v25, %v37_v42  ;;  %v180_v5 = vcombine.high %v176_v37, %v176_v37  ;;  %v381_v7 = vsel %vm325_vm0, %v3539_v24, 0.0  ;;  %v79_v37 = vld [vmem:[%s5542_s2 + $0x1f0] sm:$0xff]  ;;  %v80_v44 = vld [vmem:[%s5542_s2 + $0x1f8] sm:$0x1] }
  0x2f   :  { %v313_v9 = vmul.f32 %v236_v58, %v69_v17  ;;  %v314_v11 = vmul.f32 %v236_v58, %v70_v48  ;;  %v315_v12 = vmul.f32 %v236_v58, %v71_v34  ;;  %v316_v19 = vmul.f32 %v236_v58, %v72_v52 }
  0x30   :  { %379 = vadd.xlane.f32.xlu1 %v3517_v10  ;;  %376 = vadd.xlane.f32.xlu0 %v375_v33  ;;  %v317_v28 = vmul.f32 %v240_v60, %v73_v59  ;;  %v318_v31 = vmul.f32 %v240_v60, %v74_v61  ;;  %v319_v22 = vmul.f32 %v240_v60, %v75_v62  ;;  %v77_v33 = vld [vmem:[%s5542_s2 + $0x1e0] sm:$0xff]  ;;  %v390_v48 = vsel %vm325_vm0, %v282_v29, 0.0  ;;  %v42_v59 = vld [vmem:[%s5542_s2 + $0xc8] sm:$0xff] }
  0x31   :  { %v3737_v10 = vsel %vm325_vm0, %v313_v9, 0.0  ;;  %v3740_v24 = vsel %vm325_vm0, %v314_v11, 0.0  ;;  %v3743_v30 = vsel %vm325_vm0, %v315_v12, 0.0  ;;  %v320_v32 = vmul.f32 %v240_v60, %v76_v2  ;;  %v44_v12 = vld [vmem:[%s5542_s2 + $0xd8] sm:$0x1] }
  0x32   :  { %v3755_v40 = vsel %vm335_vm1, %v316_v19, 0.0  ;;  %v3758_v41 = vsel %vm325_vm0, %v317_v28, 0.0  ;;  %v3761_v42 = vsel %vm325_vm0, %v318_v31, 0.0  ;;  %v3764_v43 = vsel %vm325_vm0, %v319_v22, 0.0 }
  0x33   :  { %v208_v45 = vrot.slane %v129_v53, %v3431_v8  ;;  %v3771_v46 = vsel %vm335_vm1, %v320_v32, 0.0  ;;  %v244_v17 = vrot.slane %v180_v5, %v3431_v8  ;;  %v387_v34 = vsel %vm325_vm0, %v281_v1, 0.0  ;;  %v41_v53 = vld [vmem:[%s5542_s2 + $0xc0] sm:$0xff]  ;;  %v46_v32 = vld [vmem:[%s5542_s2 + $0xe8] sm:$0xff] }
  0x34   :  { %385 = vadd.xlane.f32.xlu1 %v384_v63  ;;  %382 = vadd.xlane.f32.xlu0 %v381_v7  ;;  %v284_v52 = vmul.f32 %v3543_v25, %v40_v23  ;;  %v283_v58 = vmul.f32 %v3543_v25, %v39_v13  ;;  %v131_v29 = vcombine.high %v3512_v4, %v3512_v4  ;;  %v43_v23 = vld [vmem:[%s5542_s2 + $0xd0] sm:$0xff]  ;;  %vm658_vm2 = vcmask 130112  }
  0x35   :  { %v321_v60 = vmul.f32 %v244_v17, %v77_v33  ;;  %v322_v61 = vmul.f32 %v244_v17, %v78_v36  ;;  %v323_v62 = vmul.f32 %v244_v17, %v79_v37  ;;  %v324_v63 = vmul.f32 %v244_v17, %v80_v44  ;;  %v45_v33 = vld [vmem:[%s5542_s2 + $0xe0] sm:$0xff] }
  0x36   :  { %v396_v7 = vsel %vm335_vm1, %v284_v52, 0.0  ;;  %v393_v9 = vsel %vm325_vm0, %v283_v58, 0.0  ;;  %v286_v11 = vmul.f32 %v208_v45, %v42_v59  ;;  %v285_v4 = vmul.f32 %v208_v45, %v41_v53 }
  0x37   :  { %v3787_v1 = vsel %vm325_vm0, %v321_v60, 0.0  ;;  %v3790_v25 = vsel %vm325_vm0, %v322_v61, 0.0  ;;  %v3793_v2 = vsel %vm325_vm0, %v323_v62, 0.0  ;;  %v3796_v5 = vsel %vm335_vm1, %v324_v63, 0.0 }
  0x38   :  { %391 = vadd.xlane.f32.xlu1 %v390_v48  ;;  %388 = vadd.xlane.f32.xlu0 %v387_v34  ;;  %v288_v13 = vmul.f32 %v208_v45, %v44_v12  ;;  %v402_v19 = vsel %vm325_vm0, %v286_v11, 0.0  ;;  %v399_v28 = vsel %vm325_vm0, %v285_v4, 0.0  ;;  %v287_v31 = vmul.f32 %v208_v45, %v43_v23  ;;  %v47_v45 = vld [vmem:[%s5542_s2 + $0xf0] sm:$0xff]  ;;  %v48_v48 = vld [vmem:[%s5542_s2 + $0xf8] sm:$0x1] }
  0x39   :  { %v212_v22 = vrot.slane %v131_v29, %v3431_v8  ;;  %vm665_vm3 = vcmask 195712   ;;  %vm672_vm4 = vcmask 261312   ;;  %vm959_vm5 = vcmask 1041409  }
  0x3a   :  { %v408_v36 = vsel %vm335_vm1, %v288_v13, 0.0  ;;  %v405_v37 = vsel %vm325_vm0, %v287_v31, 0.0  ;;  %vm961_vm6 = vcmask 1042434   ;;  %vm963_vm7 = vcmask 1043459  }
  0x3b   :  { %v290_v44 = vmul.f32 %v212_v22, %v46_v32  ;;  %v289_v17 = vmul.f32 %v212_v22, %v45_v33  ;;  %v291_v58 = vmul.f32 %v212_v22, %v47_v45  ;;  %v292_v59 = vmul.f32 %v212_v22, %v48_v48 }
  0x3c   :  { %397 = vadd.xlane.f32.xlu1 %v396_v7  ;;  %394 = vadd.xlane.f32.xlu0 %v393_v9  ;;  %vm965_vm8 = vcmask 1044484   ;;  %vm967_vm9 = vcmask 1045509   ;;  %vm969_vm10 = vcmask 1046534   ;;  %vm971_vm11 = vcmask 1047559  }
  0x3d   :  { %v414_v34 = vsel %vm325_vm0, %v290_v44, 0.0  ;;  %v411_v52 = vsel %vm325_vm0, %v289_v17, 0.0  ;;  %v417_v53 = vsel %vm325_vm0, %v291_v58, 0.0  ;;  %v420_v60 = vsel %vm335_vm1, %v292_v59, 0.0 }
  0x3e   :  { %vm982_vm12 = vcmask 203776   ;;  %vm3205_vm13 = vcmask 122880  }
  0x40   :  { %403 = vadd.xlane.f32.xlu1 %v402_v19  ;;  %400 = vadd.xlane.f32.xlu0 %v399_v28 }
  0x44   :  { %409 = vadd.xlane.f32.xlu1 %v408_v36  ;;  %406 = vadd.xlane.f32.xlu0 %v405_v37 }
  0x48   :  { %415 = vadd.xlane.f32.xlu1 %v414_v34  ;;  %412 = vadd.xlane.f32.xlu0 %v411_v52 }
  0x4c   :  { %418 = vadd.xlane.f32.xlu0 %v417_v53  ;;  %421 = vadd.xlane.f32.xlu1 %v420_v60 }
  0x50   :  { %424 = vadd.xlane.f32.xlu0 %v3598_v54  ;;  %427 = vadd.xlane.f32.xlu1 %v3601_v55 }
  0x54   :  { %430 = vadd.xlane.f32.xlu0 %v3604_v56  ;;  %433 = vadd.xlane.f32.xlu1 %v3607_v57  ;;  %v3234_v56 = vld [vmem:[%s5540_s0] ss:$0 sm:$0xff] }
  0x58   :  { %436 = vadd.xlane.f32.xlu0 %v3628_v14  ;;  %439 = vadd.xlane.f32.xlu1 %v3631_v15 }
  0x5c   :  { %442 = vadd.xlane.f32.xlu0 %v3634_v16  ;;  %445 = vadd.xlane.f32.xlu1 %v3637_v18 }
  0x60   :  { %448 = vadd.xlane.f32.xlu0 %v3643_v20  ;;  %451 = vadd.xlane.f32.xlu1 %v3646_v21 }
  0x64   :  { %454 = vadd.xlane.f32.xlu0 %v3649_v26  ;;  %457 = vadd.xlane.f32.xlu1 %v3652_v27 }
  0x68   :  { %460 = vadd.xlane.f32.xlu0 %v3693_v35  ;;  %463 = vadd.xlane.f32.xlu1 %v3696_v49 }
  0x6c   :  { %466 = vadd.xlane.f32.xlu0 %v3699_v50  ;;  %469 = vadd.xlane.f32.xlu1 %v3702_v51 }
  0x70   :  { %472 = vadd.xlane.f32.xlu0 %v3675_v6  ;;  %475 = vadd.xlane.f32.xlu1 %v3678_v38 }
  0x74   :  { %478 = vadd.xlane.f32.xlu0 %v3681_v39  ;;  %481 = vadd.xlane.f32.xlu1 %v3684_v47  ;;  %v648_v47 = vand.u32 127, %v87_v0 }
  0x76   :  { %v653_v50 = vadd.s32 4294967288, %v648_v47 }
  0x78   :  { %484 = vadd.xlane.f32.xlu0 %v3737_v10  ;;  %487 = vadd.xlane.f32.xlu1 %v3740_v24  ;;  %v3866_v24 = vsub.s32 %v653_v50, %v3421_v3 }
  0x7a   :  { %5664 = vst [vmem:[#allocation5_spill] sm:$0xff] %v3866_v24 }
  0x7c   :  { %490 = vadd.xlane.f32.xlu0 %v3743_v30  ;;  %493 = vadd.xlane.f32.xlu1 %v3755_v40  ;;  %v660_v40 = vadd.s32 4294967280, %v648_v47 }
  0x7e   :  { %v3880_v62 = vsub.s32 %v660_v40, %v3421_v3 }
  0x80   :  { %496 = vadd.xlane.f32.xlu0 %v3758_v41  ;;  %499 = vadd.xlane.f32.xlu1 %v3761_v42  ;;  %v667_v41 = vadd.s32 4294967272, %v648_v47  ;;  %v3871_v42 = vsub.s32 %v648_v47, %v3421_v3  ;;  %5666 = vst [vmem:[#allocation7_spill] sm:$0xff] %v3880_v62 }
  0x82   :  { %5665 = vst [vmem:[#allocation6_spill] sm:$0xff] %v3871_v42  ;;  %v3883_v63 = vsub.s32 %v667_v41, %v3421_v3 }
  0x84   :  { %502 = vadd.xlane.f32.xlu0 %v3764_v43  ;;  %505 = vadd.xlane.f32.xlu1 %v3771_v46  ;;  %5667 = vst [vmem:[#allocation8_spill] sm:$0xff] %v3883_v63 }
  0x88   :  { %508 = vadd.xlane.f32.xlu0 %v3787_v1  ;;  %511 = vadd.xlane.f32.xlu1 %v3790_v25 }
  0x8c   :  { %514 = vadd.xlane.f32.xlu0 %v3793_v2  ;;  %517 = vadd.xlane.f32.xlu1 %v3796_v5 }
  0x99   :  { %v334_v54 = vpop.xlane.xlu1 %333  ;;  %v328_v55 = vpop.xlane.xlu0 %327 }
  0x9a   :  { %v3873_v43 = vmul.f32 0.17677669, %v328_v55  ;;  %v3885_v29 = vmul.f32 0.17677669, %v334_v54 }
  0x9c   :  { %v652_v1 = vrot.slane %v3873_v43, %v3871_v42  ;;  %v664_v12 = vrot.slane %v3885_v29, %v3880_v62 }
  0x9d   :  { %v338_v57 = vpop.xlane.xlu1 %337  ;;  %v331_v14 = vpop.xlane.xlu0 %330  ;;  %1859 = vbcast.lane.b32.xlu1 %v3234_v56, 264 }
  0x9e   :  { %v3868_v30 = vmul.f32 0.17677669, %v331_v14  ;;  %v3889_v25 = vmul.f32 0.17677669, %v338_v57 }
  0xa0   :  { %v657_v61 = vrot.slane %v3868_v30, %v3866_v24  ;;  %v671_v19 = vrot.slane %v3889_v25, %v3883_v63 }
  0xa1   :  { %v344_v15 = vpop.xlane.xlu1 %343  ;;  %v341_v16 = vpop.xlane.xlu0 %340  ;;  %1863 = vbcast.lane.b32.xlu1 %v3234_v56, 272 }
  0xa2   :  { %1855 = vbcast.lane.b32.xlu0 %v3234_v56, 256  ;;  %v3891_v2 = vmul.f32 0.17677669, %v344_v15  ;;  %v3893_v5 = vmul.f32 0.17677669, %v341_v16  ;;  %v659_v11 = vsel %vm658_vm2, %v657_v61, %v652_v1 }
  0xa3   :  { %v666_v22 = vsel %vm665_vm3, %v664_v12, %v659_v11 }
  0xa4   :  { %v681_v28 = vrot.slane %v3891_v2, %v3866_v24  ;;  %v677_v31 = vrot.slane %v3893_v5, %v3871_v42  ;;  %v3924_v34 = vsel %vm672_vm4, %v671_v19, %v666_v22 }
  0xa5   :  { %v350_v18 = vpop.xlane.xlu1 %349  ;;  %v347_v20 = vpop.xlane.xlu0 %346 }
  0xa6   :  { %1867 = vbcast.lane.b32.xlu0 %v3234_v56, 280  ;;  %v3896_v4 = vmul.f32 0.17677669, %v347_v20  ;;  %v3915_v44 = vmul.f32 0.17677669, %v350_v18  ;;  %v682_v52 = vsel %vm658_vm2, %v681_v28, %v677_v31 }
  0xa8   :  { %v686_v17 = vrot.slane %v3896_v4, %v3880_v62  ;;  %v691_v57 = vrot.slane %v3915_v44, %v3883_v63 }
  0xa9   :  { %v356_v21 = vpop.xlane.xlu1 %355  ;;  %v353_v26 = vpop.xlane.xlu0 %352 }
  0xaa   :  { %v3900_v23 = vmul.f32 0.17677669, %v356_v21  ;;  %v3902_v13 = vmul.f32 0.17677669, %v353_v26  ;;  %v687_v14 = vsel %vm665_vm3, %v686_v17, %v682_v52 }
  0xac   :  { %v700_v45 = vrot.slane %v3900_v23, %v3866_v24  ;;  %v696_v48 = vrot.slane %v3902_v13, %v3871_v42 }
  0xad   :  { %v362_v27 = vpop.xlane.xlu1 %361  ;;  %v359_v6 = vpop.xlane.xlu0 %358 }
  0xae   :  { %v3927_v58 = vmul.f32 0.17677669, %v362_v27  ;;  %v3929_v59 = vmul.f32 0.17677669, %v359_v6  ;;  %v701_v18 = vsel %vm658_vm2, %v700_v45, %v696_v48 }
  0xb0   :  { %v710_v27 = vrot.slane %v3927_v58, %v3883_v63  ;;  %v705_v47 = vrot.slane %v3929_v59, %v3880_v62 }
  0xb1   :  { %v368_v38 = vpop.xlane.xlu1 %367  ;;  %v365_v39 = vpop.xlane.xlu0 %364 }
  0xb2   :  { %v3911_v32 = vmul.f32 0.17677669, %v368_v38  ;;  %v3913_v33 = vmul.f32 0.17677669, %v365_v39  ;;  %v706_v31 = vsel %vm665_vm3, %v705_v47, %v701_v18 }
  0xb4   :  { %v719_v53 = vrot.slane %v3911_v32, %v3866_v24  ;;  %v715_v60 = vrot.slane %v3913_v33, %v3871_v42 }
  0xb5   :  { %v3863_v35 = vpop.xlane.xlu1 %373  ;;  %v371_v49 = vpop.xlane.xlu0 %370 }
  0xb6   :  { %v3935_v54 = vmul.f32 0.17677669, %v371_v49  ;;  %v720_v49 = vsel %vm658_vm2, %v719_v53, %v715_v60  ;;  %v3963_v50 = vmul.f32 0.17677669, %v3863_v35 }
  0xb8   :  { %v729_v22 = vrot.slane %v3963_v50, %v3883_v63 }
  0xb9   :  { %v380_v51 = vpop.xlane.xlu1 %379  ;;  %v377_v10 = vpop.xlane.xlu0 %376 }
  0xba   :  { %v3940_v15 = vmul.f32 0.17677669, %v380_v51  ;;  %v3942_v16 = vmul.f32 0.17677669, %v377_v10  ;;  %v724_v51 = vrot.slane %v3935_v54, %v3880_v62 }
  0xbc   :  { %v738_v41 = vrot.slane %v3940_v15, %v3866_v24 }
  0xbd   :  { %v3875_v46 = vpop.xlane.xlu1 %385  ;;  %v383_v0 = vpop.xlane.xlu0 %382 }
  0xbe   :  { %v3945_v20 = vmul.f32 0.17677669, %v383_v0  ;;  %v734_v0 = vrot.slane %v3942_v16, %v3871_v42  ;;  %v3972_v61 = vmul.f32 0.17677669, %v3875_v46 }
  0xc0   :  { %v743_v35 = vrot.slane %v3945_v20, %v3880_v62  ;;  %v739_v48 = vsel %vm658_vm2, %v738_v41, %v734_v0  ;;  %v748_v52 = vrot.slane %v3972_v61, %v3883_v63 }
  0xc1   :  { %v392_v7 = vpop.xlane.xlu1 %391  ;;  %v389_v9 = vpop.xlane.xlu0 %388 }
  0xc2   :  { %v3947_v21 = vmul.f32 0.17677669, %v392_v7  ;;  %v3949_v26 = vmul.f32 0.17677669, %v389_v9 }
  0xc4   :  { %5668 = vst [vmem:[#allocation9_spill] sm:$0xff] %v3949_v26  ;;  %v757_v7 = vrot.slane %v3947_v21, %v3866_v24  ;;  %v753_v9 = vrot.slane %v3949_v26, %v3871_v42 }
  0xc5   :  { %v398_v36 = vpop.xlane.xlu1 %397  ;;  %v395_v37 = vpop.xlane.xlu0 %394 }
  0xc6   :  { %v3953_v6 = vmul.f32 0.17677669, %v395_v37  ;;  %v3982_v11 = vmul.f32 0.17677669, %v398_v36  ;;  %v725_v37 = vsel %vm665_vm3, %v724_v51, %v720_v49  ;;  %v758_v18 = vsel %vm658_vm2, %v757_v7, %v753_v9 }
  0xc7   :  { %v711_v49 = vsel %vm672_vm4, %v710_v27, %v706_v31  ;;  %v730_v41 = vsel %vm672_vm4, %v729_v22, %v725_v37 }
  0xc8   :  { %5669 = vst [vmem:[#allocation10_spill] sm:$0xff] %v3953_v6  ;;  %v762_v12 = vrot.slane %v3953_v6, %v3880_v62  ;;  %v767_v47 = vrot.slane %v3982_v11, %v3883_v63 }
  0xc9   :  { %v404_v55 = vpop.xlane.xlu1 %403  ;;  %v401_v56 = vpop.xlane.xlu0 %400 }
  0xca   :  { %v3955_v38 = vmul.f32 0.17677669, %v404_v55  ;;  %v3957_v39 = vmul.f32 0.17677669, %v401_v56  ;;  %v692_v55 = vsel %vm672_vm4, %v691_v57, %v687_v14  ;;  %v744_v56 = vsel %vm665_vm3, %v743_v35, %v739_v48 }
  0xcb   :  { %v763_v51 = vsel %vm665_vm3, %v762_v12, %v758_v18  ;;  %v960_v27 = vsel %vm959_vm5, %v692_v55, %v3924_v34 }
  0xcc   :  { %5670 = vst [vmem:[#allocation11_spill] sm:$0xff] %v3957_v39  ;;  %v776_v46 = vrot.slane %v3955_v38, %v3866_v24  ;;  %v772_v19 = vrot.slane %v3957_v39, %v3871_v42  ;;  %v962_v31 = vsel %vm961_vm6, %v711_v49, %v960_v27 }
  0xcd   :  { %v410_v10 = vpop.xlane.xlu1 %409  ;;  %v407_v40 = vpop.xlane.xlu0 %406 }
  0xce   :  { %v3974_v1 = vmul.f32 0.17677669, %v407_v40  ;;  %v3990_v28 = vmul.f32 0.17677669, %v410_v10  ;;  %v777_v10 = vsel %vm658_vm2, %v776_v46, %v772_v19  ;;  %v749_v46 = vsel %vm672_vm4, %v748_v52, %v744_v56 }
  0xcf   :  { %v768_v19 = vsel %vm672_vm4, %v767_v47, %v763_v51 }
  0xd0   :  { %5671 = vst [vmem:[#allocation12_spill] sm:$0xff] %v3974_v1  ;;  %v781_v36 = vrot.slane %v3974_v1, %v3880_v62  ;;  %v786_v40 = vrot.slane %v3990_v28, %v3883_v63 }
  0xd1   :  { %v416_v17 = vpop.xlane.xlu1 %415  ;;  %v413_v45 = vpop.xlane.xlu0 %412 }
  0xd2   :  { %v4001_v53 = vmul.f32 0.17677669, %v416_v17  ;;  %v4003_v60 = vmul.f32 0.17677669, %v413_v45  ;;  %v782_v7 = vsel %vm665_vm3, %v781_v36, %v777_v10  ;;  %v964_v36 = vsel %vm963_vm7, %v730_v41, %v962_v31 }
  0xd3   :  { %v787_v34 = vsel %vm672_vm4, %v786_v40, %v782_v7  ;;  %v966_v52 = vsel %vm965_vm8, %v749_v46, %v964_v36 }
  0xd4   :  { %5672 = vst [vmem:[#allocation13_spill] sm:$0xff] %v4003_v60  ;;  %v795_v57 = vrot.slane %v4001_v53, %v3866_v24  ;;  %v791_v14 = vrot.slane %v4003_v60, %v3871_v42  ;;  %v968_v56 = vsel %vm967_vm9, %v768_v19, %v966_v52 }
  0xd5   :  { %v419_v0 = vpop.xlane.xlu0 %418  ;;  %v422_v35 = vpop.xlane.xlu1 %421  ;;  %v970_v47 = vsel %vm969_vm10, %v787_v34, %v968_v56 }
  0xd6   :  { %v4023_v9 = vmul.f32 0.17677669, %v419_v0  ;;  %v4025_v12 = vmul.f32 0.17677669, %v422_v35  ;;  %v796_v48 = vsel %vm658_vm2, %v795_v57, %v791_v14 }
  0xd8   :  { %5673 = vst [vmem:[#allocation14_spill] sm:$0xff] %v4023_v9  ;;  %v800_v22 = vrot.slane %v4023_v9, %v3880_v62  ;;  %v805_v37 = vrot.slane %v4025_v12, %v3883_v63 }
  0xd9   :  { %v425_v17 = vpop.xlane.xlu0 %424  ;;  %v428_v45 = vpop.xlane.xlu1 %427 }
  0xda   :  { %v801_v55 = vsel %vm665_vm3, %v800_v22, %v796_v48  ;;  %v3398_v22 = vmov 0   ;;  %v4044_v36 = vmul.f32 0.17677669, %v425_v17  ;;  %v4046_v48 = vmul.f32 0.17677669, %v428_v45 }
  0xdb   :  { %v806_v18 = vsel %vm672_vm4, %v805_v37, %v801_v55  ;;  %3240 = vset.pattern.permute.xlu1 %v3398_v22  ;;  %3239 = vset.pattern.permute.xlu0 %v3398_v22 }
  0xdc   :  { %v972_v49 = vsel %vm971_vm11, %v806_v18, %v970_v47  ;;  %5674 = vst [vmem:[#allocation15_spill] sm:$0xff] %v4044_v36  ;;  %5675 = vst [vmem:[#allocation16_spill] sm:$0xff] %v4046_v48  ;;  %v810_v18 = vrot.slane %v4044_v36, %v3871_v42  ;;  %v814_v47 = vrot.slane %v4046_v48, %v3866_v24 }
  0xdd   :  { %v431_v51 = vpop.xlane.xlu0 %430  ;;  %v434_v10 = vpop.xlane.xlu1 %433  ;;  %v983_v40 = vsel %vm982_vm12, %v972_v49, -inf }
  0xde   :  { %984 = vmax.xlane.f32.xlu0 %v983_v40  ;;  %v4048_v56 = vmul.f32 0.17677669, %v431_v51  ;;  %v4054_v9 = vmul.f32 0.17677669, %v434_v10  ;;  %v815_v45 = vsel %vm658_vm2, %v814_v47, %v810_v18 }
  0xe0   :  { %5676 = vst [vmem:[#allocation17_spill] sm:$0xff] %v4048_v56  ;;  %5677 = vst [vmem:[#allocation18_spill] sm:$0xff] %v4054_v9  ;;  %v819_v17 = vrot.slane %v4048_v56, %v3880_v62  ;;  %v824_v36 = vrot.slane %v4054_v9, %v3883_v63 }
  0xe1   :  { %v437_v41 = vpop.xlane.xlu0 %436  ;;  %v440_v57 = vpop.xlane.xlu1 %439 }
  0xe2   :  { %v4059_v22 = vmul.f32 0.17677669, %v437_v41  ;;  %v4061_v60 = vmul.f32 0.17677669, %v440_v57  ;;  %v820_v10 = vsel %vm665_vm3, %v819_v17, %v815_v45 }
  0xe4   :  { %5678 = vst [vmem:[#allocation19_spill] sm:$0xff] %v4061_v60  ;;  %v829_v41 = vrot.slane %v4059_v22, %v3871_v42  ;;  %v833_v57 = vrot.slane %v4061_v60, %v3866_v24 }
  0xe5   :  { %v443_v14 = vpop.xlane.xlu0 %442  ;;  %v446_v0 = vpop.xlane.xlu1 %445 }
  0xe6   :  { %v4078_v26 = vmul.f32 0.17677669, %v443_v14 }
  0xe8   :  { %5683 = vst [vmem:[#allocation24_spill] sm:$0xff] %v4078_v26 }
  0xe9   :  { %v449_v35 = vpop.xlane.xlu0 %448  ;;  %v452_v7 = vpop.xlane.xlu1 %451 }
  0xea   :  { %v4065_v39 = vmul.f32 0.17677669, %v449_v35  ;;  %v4067_v48 = vmul.f32 0.17677669, %v452_v7  ;;  %v4080_v35 = vmul.f32 0.17677669, %v446_v0  ;;  %v4083_v7 = vsel %vm672_vm4, %v824_v36, %v820_v10 }
  0xeb   :  { %v834_v36 = vsel %vm658_vm2, %v833_v57, %v829_v41 }
  0xec   :  { %5679 = vst [vmem:[#allocation20_spill] sm:$0xff] %v4065_v39  ;;  %5680 = vst [vmem:[#allocation21_spill] sm:$0xff] %v4067_v48 }
  0xed   :  { %v455_v27 = vpop.xlane.xlu0 %454  ;;  %v458_v46 = vpop.xlane.xlu1 %457  ;;  %5684 = vst [vmem:[#allocation25_spill] sm:$0xff] %v4080_v35 }
  0xee   :  { %v4089_v17 = vmul.f32 0.17677669, %v455_v27 }
  0xf0   :  { %5685 = vst [vmem:[#allocation26_spill] sm:$0xff] %v4089_v17 }
  0xf1   :  { %v461_v19 = vpop.xlane.xlu0 %460  ;;  %v464_v31 = vpop.xlane.xlu1 %463 }
  0xf2   :  { %v4070_v6 = vmul.f32 0.17677669, %v461_v19  ;;  %v4072_v56 = vmul.f32 0.17677669, %v464_v31  ;;  %v848_v19 = vrot.slane %v4065_v39, %v3871_v42  ;;  %v852_v31 = vrot.slane %v4067_v48, %v3866_v24 }
  0xf4   :  { %5681 = vst [vmem:[#allocation22_spill] sm:$0xff] %v4070_v6  ;;  %5682 = vst [vmem:[#allocation23_spill] sm:$0xff] %v4072_v56  ;;  %v867_v45 = vrot.slane %v4070_v6, %v3871_v42  ;;  %v871_v14 = vrot.slane %v4072_v56, %v3866_v24  ;;  %v838_v6 = vrot.slane %v4078_v26, %v3880_v62 }
  0xf5   :  { %v467_v37 = vpop.xlane.xlu0 %466  ;;  %v470_v34 = vpop.xlane.xlu1 %469  ;;  %v843_v56 = vrot.slane %v4080_v35, %v3883_v63  ;;  %v853_v41 = vsel %vm658_vm2, %v852_v31, %v848_v19 }
  0xf6   :  { %v4100_v10 = vmul.f32 0.17677669, %v467_v37  ;;  %v857_v37 = vrot.slane %v4089_v17, %v3880_v62  ;;  %v872_v57 = vsel %vm658_vm2, %v871_v14, %v867_v45  ;;  %v4130_v19 = vmul.f32 0.17677669, %v470_v34 }
  0xf7   :  { %v839_v34 = vsel %vm665_vm3, %v838_v6, %v834_v36 }
  0xf8   :  { %5688 = vst [vmem:[#allocation29_spill] sm:$0xff] %v4100_v10  ;;  %v881_v6 = vrot.slane %v4130_v19, %v3883_v63 }
  0xf9   :  { %v473_v52 = vpop.xlane.xlu0 %472  ;;  %v476_v55 = vpop.xlane.xlu1 %475 }
  0xfa   :  { %v4095_v60 = vmul.f32 0.17677669, %v473_v52  ;;  %v4097_v0 = vmul.f32 0.17677669, %v476_v55 }
  0xfc   :  { %5686 = vst [vmem:[#allocation27_spill] sm:$0xff] %v4095_v60  ;;  %5687 = vst [vmem:[#allocation28_spill] sm:$0xff] %v4097_v0  ;;  %v886_v26 = vrot.slane %v4095_v60, %v3871_v42 }
  0xfd   :  { %v479_v49 = vpop.xlane.xlu0 %478  ;;  %v482_v40 = vpop.xlane.xlu1 %481 }
  0xfe   :  { %v4136_v14 = vmul.f32 0.17677669, %v482_v40  ;;  %v858_v40 = vsel %vm665_vm3, %v857_v37, %v853_v41 }
 0x100   :  { %5695 = vst [vmem:[#allocation36_spill] sm:$0xff] %v4136_v14 }
 0x101   :  { %v485_v51 = vpop.xlane.xlu0 %484  ;;  %v488_v1 = vpop.xlane.xlu1 %487 }
 0x102   :  { %v4102_v9 = vmul.f32 0.17677669, %v485_v51  ;;  %v4104_v39 = vmul.f32 0.17677669, %v488_v1  ;;  %v4117_v51 = vmul.f32 0.17677669, %v458_v46 }
 0x103   :  { %v4119_v1 = vmul.f32 0.17677669, %v479_v49 }
 0x104   :  { %5689 = vst [vmem:[#allocation30_spill] sm:$0xff] %v4102_v9  ;;  %5690 = vst [vmem:[#allocation31_spill] sm:$0xff] %v4104_v39  ;;  %v905_v46 = vrot.slane %v4102_v9, %v3871_v42  ;;  %v909_v49 = vrot.slane %v4104_v39, %v3866_v24  ;;  %v862_v9 = vrot.slane %v4117_v51, %v3883_v63 }
 0x105   :  { %v491_v18 = vpop.xlane.xlu0 %490  ;;  %v494_v47 = vpop.xlane.xlu1 %493  ;;  %5693 = vst [vmem:[#allocation34_spill] sm:$0xff] %v4117_v51  ;;  %5694 = vst [vmem:[#allocation35_spill] sm:$0xff] %v4119_v1  ;;  %v895_v39 = vrot.slane %v4119_v1, %v3880_v62 }
 0x106   :  { %v4126_v35 = vmul.f32 0.17677669, %v491_v18  ;;  %v910_v36 = vsel %vm658_vm2, %v909_v49, %v905_v46 }
 0x109   :  { %v497_v27 = vpop.xlane.xlu0 %496  ;;  %v500_v48 = vpop.xlane.xlu1 %499 }
 0x10a   :  { %v4110_v52 = vmul.f32 0.17677669, %v497_v27  ;;  %v4112_v55 = vmul.f32 0.17677669, %v500_v48  ;;  %v890_v27 = vrot.slane %v4097_v0, %v3866_v24  ;;  %v876_v48 = vrot.slane %v4100_v10, %v3880_v62 }
 0x10b   :  { %v4149_v10 = vmul.f32 0.17677669, %v494_v47 }
 0x10c   :  { %5691 = vst [vmem:[#allocation32_spill] sm:$0xff] %v4110_v52  ;;  %5692 = vst [vmem:[#allocation33_spill] sm:$0xff] %v4112_v55  ;;  %v924_v0 = vrot.slane %v4110_v52, %v3871_v42  ;;  %v928_v18 = vrot.slane %v4112_v55, %v3866_v24  ;;  %v891_v17 = vsel %vm658_vm2, %v890_v27, %v886_v26 }
 0x10d   :  { %v503_v31 = vpop.xlane.xlu0 %502  ;;  %v506_v45 = vpop.xlane.xlu1 %505  ;;  %v914_v52 = vrot.slane %v4126_v35, %v3880_v62  ;;  %v900_v26 = vrot.slane %v4136_v14, %v3883_v63  ;;  %v896_v46 = vsel %vm665_vm3, %v895_v39, %v891_v17  ;;  %v919_v49 = vrot.slane %v4149_v10, %v3883_v63 }
 0x10e   :  { %v4142_v60 = vmul.f32 0.17677669, %v503_v31  ;;  %v4155_v55 = vmul.f32 0.17677669, %v506_v45  ;;  %v877_v31 = vsel %vm665_vm3, %v876_v48, %v872_v57  ;;  %v929_v41 = vsel %vm658_vm2, %v928_v18, %v924_v0 }
 0x10f   :  { %v844_v57 = vsel %vm672_vm4, %v843_v56, %v839_v34  ;;  %v863_v48 = vsel %vm672_vm4, %v862_v9, %v858_v40  ;;  %v915_v45 = vsel %vm665_vm3, %v914_v52, %v910_v36  ;;  %v882_v56 = vsel %vm672_vm4, %v881_v6, %v877_v31 }
 0x110   :  { %v933_v47 = vrot.slane %v4142_v60, %v3880_v62  ;;  %v938_v14 = vrot.slane %v4155_v55, %v3883_v63  ;;  %v973_v17 = vsel %vm959_vm5, %v844_v57, %v4083_v7  ;;  %v901_v52 = vsel %vm672_vm4, %v900_v26, %v896_v46 }
 0x111   :  { %v509_v51 = vpop.xlane.xlu0 %508  ;;  %v512_v1 = vpop.xlane.xlu1 %511  ;;  %v974_v40 = vsel %vm961_vm6, %v863_v48, %v973_v17  ;;  %v920_v36 = vsel %vm672_vm4, %v919_v49, %v915_v45 }
 0x112   :  { %v4166_v37 = vmul.f32 0.17677669, %v509_v51  ;;  %v4168_v27 = vmul.f32 0.17677669, %v512_v1  ;;  %v934_v39 = vsel %vm665_vm3, %v933_v47, %v929_v41  ;;  %v975_v47 = vsel %vm963_vm7, %v882_v56, %v974_v40 }
 0x113   :  { %v939_v7 = vsel %vm672_vm4, %v938_v14, %v934_v39  ;;  %v976_v26 = vsel %vm965_vm8, %v901_v52, %v975_v47  ;;  %v1001_v56 = vsub.s32 2, %v3421_v3  ;;  %v997_v52 = vsub.s32 1, %v3421_v3 }
 0x114   :  { %v943_v0 = vrot.slane %v4166_v37, %v3871_v42  ;;  %v947_v51 = vrot.slane %v4168_v27, %v3866_v24  ;;  %v977_v57 = vsel %vm967_vm9, %v920_v36, %v976_v26  ;;  %v1005_v36 = vsub.s32 3, %v3421_v3 }
 0x115   :  { %v515_v1 = vpop.xlane.xlu0 %514  ;;  %v518_v9 = vpop.xlane.xlu1 %517  ;;  %v978_v46 = vsel %vm969_vm10, %v939_v7, %v977_v57  ;;  %v5577_v57 = vsub.s32 4, %v3421_v3 }
 0x116   :  { %v4187_v18 = vmul.f32 0.17677669, %v515_v1  ;;  %v4189_v34 = vmul.f32 0.17677669, %v518_v9  ;;  %v948_v42 = vsel %vm658_vm2, %v947_v51, %v943_v0 }
 0x118   :  { %v952_v31 = vrot.slane %v4187_v18, %v3880_v62  ;;  %v957_v6 = vrot.slane %v4189_v34, %v3883_v63  ;;  %v5742_v63 = vld [vmem:[#allocation16_spill] sm:$0xff] }
 0x119   :  { %v4207_v0 = vpop.permute.xlu0 %1855 }
 0x11a   :  { %v953_v41 = vsel %vm665_vm3, %v952_v31, %v948_v42  ;;  %5696 = vst [vmem:[#allocation37_spill] sm:$0xff] %v4207_v0 }
 0x11b   :  { %v958_v48 = vsel %vm672_vm4, %v957_v6, %v953_v41 }
 0x11c   :  { %v979_v49 = vsel %vm971_vm11, %v958_v48, %v978_v46 }
 0x11d   :  { %v986_v45 = vsel %vm982_vm12, %v979_v49, -inf  ;;  %v4209_v14 = vpop.permute.xlu0 %1867 }
 0x11e   :  { %987 = vmax.xlane.f32.xlu1 %v986_v45 }
 0x167   :  { %v4211_v51 = vpop.xlane.xlu0 %984 }
 0x168   :  { %v994_v42 = vrot.slane %v4211_v51, %v3431_v8  ;;  %v4220_v9 = vrot.slane %v4211_v51, %v1001_v56 }
 0x16a   :  { %v1072_v1 = vsub.f32 %v3868_v30, %v994_v42  ;;  %v1071_v17 = vsub.f32 %v3873_v43, %v994_v42  ;;  %v1073_v40 = vsub.f32 %v3885_v29, %v994_v42  ;;  %v1080_v6 = vsub.f32 %v3900_v23, %v4220_v9 }
 0x16b   :  { %v998_v30 = vrot.slane %v4211_v51, %v997_v52  ;;  %v1074_v47 = vsub.f32 %v3889_v25, %v994_v42  ;;  %v4235_v43 = vrot.slane %v4211_v51, %v1005_v36  ;;  %v1082_v26 = vsub.f32 %v3927_v58, %v4220_v9 }
 0x16c   :  { %v1137_v39 = vmul.f32 1.442695, %v1072_v1  ;;  %v1135_v31 = vmul.f32 1.442695, %v1071_v17  ;;  %v1139_v7 = vmul.f32 1.442695, %v1073_v40  ;;  %v4249_v58 = vrot.slane %v4211_v51, %v5577_v57 }
 0x16d   :  { %v1153_v29 = vmul.f32 1.442695, %v1080_v6  ;;  %v1141_v41 = vmul.f32 1.442695, %v1074_v47  ;;  %v1075_v23 = vsub.f32 %v3893_v5, %v998_v30  ;;  %v1157_v48 = vmul.f32 1.442695, %v1082_v26 }
 0x16e   :  { %3243 = vpow2.f32 %v1137_v39  ;;  %v1084_v25 = vsub.f32 %v3911_v32, %v4235_v43  ;;  %v1076_v49 = vsub.f32 %v3891_v2, %v998_v30  ;;  %v1086_v42 = vsub.f32 %v3963_v50, %v4235_v43 }
 0x16f   :  { %3245 = vpow2.f32 %v1135_v31  ;;  %v1143_v46 = vmul.f32 1.442695, %v1075_v23  ;;  %v1077_v1 = vsub.f32 %v3896_v4, %v998_v30  ;;  %v5576_v2 = vsub.s32 5, %v3421_v3 }
 0x170   :  { %3247 = vpow2.f32 %v1139_v7  ;;  %v1161_v5 = vmul.f32 1.442695, %v1084_v25  ;;  %v1145_v32 = vmul.f32 1.442695, %v1076_v49  ;;  %v1165_v39 = vmul.f32 1.442695, %v1086_v42 }
 0x171   :  { %3249 = vpow2.f32 %v1153_v29  ;;  %v1088_v17 = vsub.f32 %v3940_v15, %v4249_v58  ;;  %v1147_v31 = vmul.f32 1.442695, %v1077_v1  ;;  %v1078_v6 = vsub.f32 %v3915_v44, %v998_v30 }
 0x172   :  { %3251 = vpow2.f32 %v1141_v41  ;;  %v4268_v4 = vrot.slane %v4211_v51, %v5576_v2  ;;  %v1090_v15 = vsub.f32 %v3972_v61, %v4249_v58  ;;  %v1079_v30 = vsub.f32 %v3902_v13, %v4220_v9 }
 0x173   :  { %3253 = vpow2.f32 %v1157_v48  ;;  %v1169_v50 = vmul.f32 1.442695, %v1088_v17  ;;  %v1149_v44 = vmul.f32 1.442695, %v1078_v6  ;;  %v5575_v26 = vsub.s32 6, %v3421_v3 }
 0x174   :  { %3255 = vpow2.f32 %v1143_v46  ;;  %v1173_v41 = vmul.f32 1.442695, %v1090_v15  ;;  %v1092_v61 = vsub.f32 %v3947_v21, %v4268_v4  ;;  %v1151_v48 = vmul.f32 1.442695, %v1079_v30 }
 0x175   :  { %3257 = vpow2.f32 %v1161_v5  ;;  %v1081_v13 = vsub.f32 %v3929_v59, %v4220_v9  ;;  %v4294_v46 = vrot.slane %v4211_v51, %v5575_v26  ;;  %v1094_v49 = vsub.f32 %v3982_v11, %v4268_v4 }
 0x176   :  { %3259 = vpow2.f32 %v1145_v32  ;;  %v1177_v21 = vmul.f32 1.442695, %v1092_v61  ;;  %v1083_v9 = vsub.f32 %v3913_v33, %v4235_v43  ;;  %v5574_v32 = vsub.s32 7, %v3421_v3 }
 0x177   :  { %3261 = vpow2.f32 %v1165_v39  ;;  %v1155_v59 = vmul.f32 1.442695, %v1081_v13  ;;  %v1181_v1 = vmul.f32 1.442695, %v1094_v49  ;;  %v1096_v11 = vsub.f32 %v3955_v38, %v4294_v46  ;;  %v5713_v49 = vld [vmem:[#allocation9_spill] sm:$0xff] }
 0x178   :  { %3263 = vpow2.f32 %v1147_v31  ;;  %v1159_v17 = vmul.f32 1.442695, %v1083_v9  ;;  %v1085_v33 = vsub.f32 %v3935_v54, %v4235_v43  ;;  %v4320_v6 = vrot.slane %v4211_v51, %v5574_v32 }
 0x179   :  { %3265 = vpow2.f32 %v1169_v50  ;;  %v1185_v38 = vmul.f32 1.442695, %v1096_v11  ;;  %v1098_v50 = vsub.f32 %v3990_v28, %v4294_v46  ;;  %v1087_v43 = vsub.f32 %v3942_v16, %v4249_v58 }
 0x17a   :  { %3267 = vpow2.f32 %v1149_v44  ;;  %v1163_v54 = vmul.f32 1.442695, %v1085_v33  ;;  %v1100_v30 = vsub.f32 %v4001_v53, %v4320_v6  ;;  %v1089_v61 = vsub.f32 %v3945_v20, %v4249_v58  ;;  %v4360_v33 = vpop.permute.xlu1 %1859 }
 0x17b   :  { %v4244_v45 = vpop.eup %3243  ;;  %3269 = vpow2.f32 %v1173_v41  ;;  %v1189_v51 = vmul.f32 1.442695, %v1098_v50  ;;  %v1167_v28 = vmul.f32 1.442695, %v1087_v43  ;;  %v1102_v13 = vsub.f32 %v4025_v12, %v4320_v6  ;;  %v5719_v50 = vld [vmem:[#allocation11_spill] sm:$0xff] }
 0x17c   :  { %5697 = vst [vmem:[#allocation38_spill] sm:$0xff] %v4244_v45  ;;  %1331 = vperm.xlu1 %3240, %v4244_v45   ;;  %v4258_v40 = vpop.eup %3245  ;;  %3271 = vpow2.f32 %v1151_v48  ;;  %v1193_v16 = vmul.f32 1.442695, %v1100_v30  ;;  %v1171_v53 = vmul.f32 1.442695, %v1089_v61  ;;  %v5722_v30 = vld [vmem:[#allocation12_spill] sm:$0xff] }
 0x17d   :  { %5698 = vst [vmem:[#allocation39_spill] sm:$0xff] %v4258_v40  ;;  %v4261_v7 = vpop.eup %3247  ;;  %1328 = vperm.xlu0 %3239, %v4258_v40   ;;  %3273 = vpow2.f32 %v1177_v21  ;;  %v1197_v20 = vmul.f32 1.442695, %v1102_v13 }
 0x17e   :  { %5699 = vst [vmem:[#allocation40_spill] sm:$0xff] %v4261_v7  ;;  %v4272_v47 = vpop.eup %3249  ;;  %3275 = vpow2.f32 %v1155_v59  ;;  %v1091_v59 = vsub.f32 %v5713_v49, %v4268_v4  ;;  %v4376_v13 = vpop.permute.xlu1 %1863  ;;  %v5726_v49 = vld [vmem:[#allocation13_spill] sm:$0xff] }
 0x17f   :  { %5700 = vst [vmem:[#allocation41_spill] sm:$0xff] %v4272_v47  ;;  %v4276_v29 = vpop.eup %3251  ;;  %3277 = vpow2.f32 %v1181_v1  ;;  %v5716_v1 = vld [vmem:[#allocation10_spill] sm:$0xff]  ;;  %5724 = vst [vmem:[#allocation57_spill] sm:$0xff] %v4376_v13 }
 0x180   :  { %1334 = vperm.xlu1 %3240, %v4261_v7   ;;  %5701 = vst [vmem:[#allocation42_spill] sm:$0xff] %v4276_v29  ;;  %v4283_v23 = vpop.eup %3253  ;;  %3279 = vpow2.f32 %v1159_v17  ;;  %v1093_v12 = vsub.f32 %v5716_v1, %v4268_v4  ;;  %v1175_v11 = vmul.f32 1.442695, %v1091_v59  ;;  %v1099_v59 = vsub.f32 %v5726_v49, %v4320_v6 }
 0x181   :  { %1355 = vperm.xlu0 %3239, %v4272_v47   ;;  %5702 = vst [vmem:[#allocation43_spill] sm:$0xff] %v4283_v23  ;;  %v4287_v25 = vpop.eup %3255  ;;  %3281 = vpow2.f32 %v1185_v38 }
 0x182   :  { %5703 = vst [vmem:[#allocation44_spill] sm:$0xff] %v4287_v25  ;;  %v4298_v5 = vpop.eup %3257  ;;  %3283 = vpow2.f32 %v1163_v54  ;;  %v1095_v54 = vsub.f32 %v5719_v50, %v4294_v46  ;;  %v1179_v43 = vmul.f32 1.442695, %v1093_v12 }
 0x183   :  { %5704 = vst [vmem:[#allocation45_spill] sm:$0xff] %v4298_v5  ;;  %v4302_v42 = vpop.eup %3259  ;;  %3285 = vpow2.f32 %v1189_v51 }
 0x184   :  { %1337 = vperm.xlu1 %3240, %v4276_v29   ;;  %5705 = vst [vmem:[#allocation46_spill] sm:$0xff] %v4302_v42  ;;  %v4309_v39 = vpop.eup %3261  ;;  %3287 = vpow2.f32 %v1167_v28  ;;  %v1097_v28 = vsub.f32 %v5722_v30, %v4294_v46  ;;  %v1183_v61 = vmul.f32 1.442695, %v1095_v54  ;;  %v1191_v54 = vmul.f32 1.442695, %v1099_v59 }
 0x185   :  { %1361 = vperm.xlu0 %3239, %v4283_v23   ;;  %5706 = vst [vmem:[#allocation47_spill] sm:$0xff] %v4309_v39  ;;  %v4313_v31 = vpop.eup %3263  ;;  %3289 = vpow2.f32 %v1193_v16 }
 0x186   :  { %5707 = vst [vmem:[#allocation48_spill] sm:$0xff] %v4313_v31  ;;  %v4324_v15 = vpop.eup %3265  ;;  %3291 = vpow2.f32 %v1171_v53 }
 0x187   :  { %5708 = vst [vmem:[#allocation49_spill] sm:$0xff] %v4324_v15  ;;  %v4328_v44 = vpop.eup %3267  ;;  %3293 = vpow2.f32 %v1197_v20  ;;  %v1187_v20 = vmul.f32 1.442695, %v1097_v28 }
 0x188   :  { %1340 = vperm.xlu1 %3240, %v4287_v25   ;;  %5709 = vst [vmem:[#allocation50_spill] sm:$0xff] %v4328_v44  ;;  %v4334_v41 = vpop.eup %3269  ;;  %3295 = vpow2.f32 %v1175_v11  ;;  %v5729_v11 = vld [vmem:[#allocation14_spill] sm:$0xff] }
 0x189   :  { %1367 = vperm.xlu0 %3239, %v4298_v5   ;;  %5710 = vst [vmem:[#allocation51_spill] sm:$0xff] %v4334_v41  ;;  %v4338_v48 = vpop.eup %3271  ;;  %3297 = vpow2.f32 %v1179_v43  ;;  %v1101_v50 = vsub.f32 %v5729_v11, %v4320_v6 }
 0x18a   :  { %5711 = vst [vmem:[#allocation52_spill] sm:$0xff] %v4338_v48  ;;  %v4344_v21 = vpop.eup %3273  ;;  %3299 = vpow2.f32 %v1183_v61  ;;  %v5731_v61 = vld [vmem:[#allocation15_spill] sm:$0xff] }
 0x18b   :  { %5712 = vst [vmem:[#allocation53_spill] sm:$0xff] %v4344_v21  ;;  %v4348_v9 = vpop.eup %3275  ;;  %3301 = vpow2.f32 %v1187_v20  ;;  %v1195_v28 = vmul.f32 1.442695, %v1101_v50 }
 0x18c   :  { %1343 = vperm.xlu1 %3240, %v4302_v42   ;;  %5714 = vst [vmem:[#allocation9_spill] sm:$0xff] %v4348_v9  ;;  %v4352_v58 = vpop.eup %3277  ;;  %3303 = vpow2.f32 %v1191_v54 }
 0x18d   :  { %1373 = vperm.xlu0 %3239, %v4309_v39   ;;  %5715 = vst [vmem:[#allocation54_spill] sm:$0xff] %v4352_v58  ;;  %v4356_v17 = vpop.eup %3279  ;;  %3305 = vpow2.f32 %v1195_v28 }
 0x18e   :  { %5717 = vst [vmem:[#allocation10_spill] sm:$0xff] %v4356_v17  ;;  %v4362_v38 = vpop.eup %3281 }
 0x18f   :  { %5718 = vst [vmem:[#allocation55_spill] sm:$0xff] %v4362_v38  ;;  %v4366_v51 = vpop.eup %3283 }
 0x190   :  { %1346 = vperm.xlu1 %3240, %v4313_v31   ;;  %5720 = vst [vmem:[#allocation11_spill] sm:$0xff] %v4366_v51  ;;  %v4370_v4 = vpop.eup %3285 }
 0x191   :  { %1379 = vperm.xlu0 %3239, %v4324_v15   ;;  %5721 = vst [vmem:[#allocation56_spill] sm:$0xff] %v4370_v4  ;;  %v4374_v16 = vpop.eup %3287 }
 0x192   :  { %5723 = vst [vmem:[#allocation12_spill] sm:$0xff] %v4374_v16  ;;  %v4380_v53 = vpop.eup %3289 }
 0x193   :  { %5725 = vst [vmem:[#allocation58_spill] sm:$0xff] %v4380_v53  ;;  %v4384_v1 = vpop.eup %3291 }
 0x194   :  { %1349 = vperm.xlu1 %3240, %v4328_v44   ;;  %5727 = vst [vmem:[#allocation13_spill] sm:$0xff] %v4384_v1  ;;  %v4390_v12 = vpop.eup %3293 }
 0x195   :  { %1385 = vperm.xlu0 %3239, %v4334_v41   ;;  %5728 = vst [vmem:[#allocation59_spill] sm:$0xff] %v4390_v12  ;;  %v4396_v30 = vpop.eup %3295 }
 0x196   :  { %5730 = vst [vmem:[#allocation14_spill] sm:$0xff] %v4396_v30  ;;  %v4401_v32 = vpop.eup %3297 }
 0x197   :  { %5732 = vst [vmem:[#allocation15_spill] sm:$0xff] %v4401_v32  ;;  %v4408_v11 = vpop.eup %3299 }
 0x198   :  { %1352 = vperm.xlu1 %3240, %v4338_v48  }
 0x199   :  { %1391 = vperm.xlu0 %3239, %v4344_v21  }
 0x19c   :  { %1358 = vperm.xlu1 %3240, %v4348_v9  }
 0x19d   :  { %1397 = vperm.xlu0 %3239, %v4352_v58  }
 0x1a0   :  { %1364 = vperm.xlu1 %3240, %v4356_v17  }
 0x1a1   :  { %1403 = vperm.xlu0 %3239, %v4362_v38  }
 0x1a4   :  { %1370 = vperm.xlu1 %3240, %v4366_v51  }
 0x1a5   :  { %1409 = vperm.xlu0 %3239, %v4370_v4  }
 0x1a7   :  { %v4386_v46 = vpop.xlane.xlu1 %987 }
 0x1a8   :  { %1376 = vperm.xlu1 %3240, %v4374_v16   ;;  %v1026_v43 = vrot.slane %v4386_v46, %v3431_v8  ;;  %v1030_v6 = vrot.slane %v4386_v46, %v997_v52  ;;  %v5733_v8 = vld [vmem:[#allocation17_spill] sm:$0xff]  ;;  %v4418_v28 = vrot.slane %v4386_v46, %v1001_v56  ;;  %v5736_v52 = vld [vmem:[#allocation24_spill] sm:$0xff]  ;;  %v4432_v56 = vrot.slane %v4386_v46, %v1005_v36  ;;  %v5745_v36 = vld [vmem:[#allocation18_spill] sm:$0xff] }
 0x1a9   :  { %1415 = vperm.xlu0 %3239, %v4380_v53   ;;  %5734 = vst [vmem:[#allocation17_spill] sm:$0xff] %v4408_v11 }
 0x1aa   :  { %v1103_v49 = vsub.f32 %v5731_v61, %v1026_v43  ;;  %v1105_v59 = vsub.f32 %v5733_v8, %v1026_v43  ;;  %v1107_v50 = vsub.f32 %v4059_v22, %v1030_v6  ;;  %v4412_v61 = vpop.eup %3301  ;;  %v1109_v8 = vsub.f32 %v5736_v52, %v1030_v6  ;;  %v5738_v22 = vld [vmem:[#allocation20_spill] sm:$0xff] }
 0x1ab   :  { %5735 = vst [vmem:[#allocation60_spill] sm:$0xff] %v4412_v61  ;;  %v4421_v26 = vpop.eup %3303 }
 0x1ac   :  { %1382 = vperm.xlu1 %3240, %v4384_v1   ;;  %v1199_v20 = vmul.f32 1.442695, %v1103_v49  ;;  %v1203_v54 = vmul.f32 1.442695, %v1105_v59  ;;  %v1207_v49 = vmul.f32 1.442695, %v1107_v50  ;;  %v1111_v59 = vsub.f32 %v5738_v22, %v4418_v28  ;;  %v4426_v2 = vpop.eup %3305 }
 0x1ad   :  { %1421 = vperm.xlu0 %3239, %v4390_v12   ;;  %5737 = vst [vmem:[#allocation24_spill] sm:$0xff] %v4421_v26  ;;  %5739 = vst [vmem:[#allocation20_spill] sm:$0xff] %v4426_v2  ;;  %v5740_v50 = vld [vmem:[#allocation26_spill] sm:$0xff]  ;;  %v1104_v22 = vsub.f32 %v5742_v63, %v1026_v43  ;;  %v1106_v12 = vsub.f32 %v5745_v36, %v1026_v43  ;;  %v5747_v63 = vld [vmem:[#allocation29_spill] sm:$0xff] }
 0x1ae   :  { %3307 = vpow2.f32 %v1199_v20  ;;  %v1211_v20 = vmul.f32 1.442695, %v1109_v8  ;;  %v1215_v52 = vmul.f32 1.442695, %v1111_v59  ;;  %v5743_v8 = vld [vmem:[#allocation22_spill] sm:$0xff]  ;;  %v5746_v59 = vsub.s32 4, %v3421_v3 }
 0x1af   :  { %3309 = vpow2.f32 %v1203_v54  ;;  %v1113_v54 = vsub.f32 %v5740_v50, %v4418_v28  ;;  %v1201_v53 = vmul.f32 1.442695, %v1104_v22  ;;  %v1117_v50 = vsub.f32 %v5747_v63, %v4432_v56  ;;  %v5750_v43 = vld [vmem:[#allocation27_spill] sm:$0xff] }
 0x1b0   :  { %1388 = vperm.xlu1 %3240, %v4396_v30   ;;  %3311 = vpow2.f32 %v1207_v49  ;;  %v1115_v49 = vsub.f32 %v5743_v8, %v4432_v56  ;;  %v1205_v38 = vmul.f32 1.442695, %v1106_v12 }
 0x1b1   :  { %3313 = vpow2.f32 %v1211_v20  ;;  %v1219_v62 = vmul.f32 1.442695, %v1113_v54  ;;  %v4449_v20 = vrot.slane %v4386_v46, %v5746_v59  ;;  %v5749_v54 = vld [vmem:[#allocation19_spill] sm:$0xff]  ;;  %v1227_v36 = vmul.f32 1.442695, %v1117_v50  ;;  %v5756_v50 = vld [vmem:[#allocation21_spill] sm:$0xff] }
 0x1b2   :  { %3315 = vpow2.f32 %v1215_v52  ;;  %v1223_v4 = vmul.f32 1.442695, %v1115_v49  ;;  %v1108_v52 = vsub.f32 %v5749_v54, %v1030_v6  ;;  %v5753_v49 = vsub.s32 5, %v3421_v3 }
 0x1b3   :  { %3317 = vpow2.f32 %v1219_v62  ;;  %v1119_v22 = vsub.f32 %v5750_v43, %v4449_v20  ;;  %v1112_v43 = vsub.f32 %v5756_v50, %v4418_v28 }
 0x1b4   :  { %1394 = vperm.xlu1 %3240, %v4401_v32   ;;  %3319 = vpow2.f32 %v1201_v53  ;;  %v1209_v62 = vmul.f32 1.442695, %v1108_v52  ;;  %v4466_v12 = vrot.slane %v4386_v46, %v5753_v49  ;;  %v5754_v53 = vld [vmem:[#allocation35_spill] sm:$0xff] }
 0x1b5   :  { %3321 = vpow2.f32 %v1223_v4  ;;  %v1121_v63 = vsub.f32 %v5754_v53, %v4449_v20  ;;  %v1231_v54 = vmul.f32 1.442695, %v1119_v22  ;;  %v5759_v53 = vld [vmem:[#allocation34_spill] sm:$0xff]  ;;  %v1217_v22 = vmul.f32 1.442695, %v1112_v43 }
 0x1b6   :  { %3323 = vpow2.f32 %v1205_v38  ;;  %v5757_v38 = vld [vmem:[#allocation30_spill] sm:$0xff] }
 0x1b7   :  { %3325 = vpow2.f32 %v1227_v36  ;;  %v1235_v52 = vmul.f32 1.442695, %v1121_v63  ;;  %v1114_v36 = vsub.f32 %v5759_v53, %v4418_v28  ;;  %v1125_v63 = vsub.f32 %v4126_v35, %v4466_v12  ;;  %v5763_v28 = vld [vmem:[#allocation23_spill] sm:$0xff]  ;;  %v5765_v53 = vld [vmem:[#allocation32_spill] sm:$0xff] }
 0x1b8   :  { %1400 = vperm.xlu1 %3240, %v4408_v11   ;;  %3327 = vpow2.f32 %v1209_v62  ;;  %v1116_v43 = vsub.f32 %v5763_v28, %v4432_v56 }
 0x1b9   :  { %3329 = vpow2.f32 %v1231_v54  ;;  %v1243_v35 = vmul.f32 1.442695, %v1125_v63 }
 0x1ba   :  { %v1225_v28 = vmul.f32 1.442695, %v1116_v43 }
 0x1bb   :  { %v4436_v57 = vpop.eup %3307 }
 0x1bc   :  { %1406 = vperm.xlu1 %3240, %v4412_v61   ;;  %5741 = vst [vmem:[#allocation26_spill] sm:$0xff] %v4436_v57  ;;  %v4442_v24 = vpop.eup %3309 }
 0x1bd   :  { %5744 = vst [vmem:[#allocation16_spill] sm:$0xff] %v4442_v24  ;;  %v4453_v8 = vpop.eup %3311 }
 0x1be   :  { %5748 = vst [vmem:[#allocation22_spill] sm:$0xff] %v4453_v8  ;;  %v4459_v59 = vpop.eup %3313 }
 0x1bf   :  { %5751 = vst [vmem:[#allocation18_spill] sm:$0xff] %v4459_v59  ;;  %v4470_v4 = vpop.eup %3315 }
 0x1c0   :  { %1412 = vperm.xlu1 %3240, %v4421_v26   ;;  %5755 = vst [vmem:[#allocation29_spill] sm:$0xff] %v4470_v4  ;;  %v4477_v49 = vpop.eup %3317 }
 0x1c1   :  { %5758 = vst [vmem:[#allocation19_spill] sm:$0xff] %v4477_v49 }
 0x1c4   :  { %1418 = vperm.xlu1 %3240, %v4426_v2  }
 0x1c8   :  { %1424 = vperm.xlu1 %3240, %v4436_v57  }
 0x1cc   :  { %1430 = vperm.xlu1 %3240, %v4442_v24   ;;  %v5752_v24 = vld [vmem:[#allocation25_spill] sm:$0xff] }
 0x1cd   :  { %v1110_v58 = vsub.f32 %v5752_v24, %v1030_v6  ;;  %v1123_v6 = vsub.f32 %v5757_v38, %v4466_v12 }
 0x1cf   :  { %v1213_v24 = vmul.f32 1.442695, %v1110_v58  ;;  %v5761_v58 = vsub.s32 6, %v3421_v3  ;;  %v1239_v54 = vmul.f32 1.442695, %v1123_v6  ;;  %v1118_v6 = vsub.f32 %v4130_v19, %v4432_v56  ;;  %v5770_v19 = vld [vmem:[#allocation28_spill] sm:$0xff] }
 0x1d0   :  { %1436 = vperm.xlu1 %3240, %v4453_v8   ;;  %v1120_v56 = vsub.f32 %v5770_v19, %v4449_v20 }
 0x1d1   :  { %3331 = vpow2.f32 %v1213_v24  ;;  %v4488_v62 = vrot.slane %v4386_v46, %v5761_v58  ;;  %v1221_v24 = vmul.f32 1.442695, %v1114_v36  ;;  %v5768_v36 = vsub.s32 7, %v3421_v3 }
 0x1d2   :  { %3333 = vpow2.f32 %v1235_v52  ;;  %v1229_v43 = vmul.f32 1.442695, %v1118_v6 }
 0x1d3   :  { %3335 = vpow2.f32 %v1217_v22  ;;  %v1127_v58 = vsub.f32 %v5765_v53, %v4488_v62  ;;  %v1129_v63 = vsub.f32 %v4142_v60, %v4488_v62 }
 0x1d4   :  { %1442 = vperm.xlu1 %3240, %v4459_v59   ;;  %v4481_v59 = vpop.eup %3319  ;;  %3337 = vpow2.f32 %v1239_v54 }
 0x1d5   :  { %5760 = vst [vmem:[#allocation27_spill] sm:$0xff] %v4481_v59  ;;  %1427 = vperm.xlu0 %3239, %v4481_v59   ;;  %v4492_v50 = vpop.eup %3321  ;;  %3339 = vpow2.f32 %v1221_v24  ;;  %v1247_v54 = vmul.f32 1.442695, %v1127_v58  ;;  %v1251_v60 = vmul.f32 1.442695, %v1129_v63  ;;  %v5773_v58 = vld [vmem:[#allocation36_spill] sm:$0xff] }
 0x1d6   :  { %5762 = vst [vmem:[#allocation25_spill] sm:$0xff] %v4492_v50  ;;  %v4496_v38 = vpop.eup %3323  ;;  %3341 = vpow2.f32 %v1243_v35  ;;  %v1122_v35 = vsub.f32 %v5773_v58, %v4449_v20  ;;  %v5776_v63 = vld [vmem:[#allocation31_spill] sm:$0xff] }
 0x1d7   :  { %5764 = vst [vmem:[#allocation35_spill] sm:$0xff] %v4496_v38  ;;  %v4502_v52 = vpop.eup %3325  ;;  %3343 = vpow2.f32 %v1225_v28  ;;  %v1124_v19 = vsub.f32 %v5776_v63, %v4466_v12 }
 0x1d8   :  { %1448 = vperm.xlu1 %3240, %v4470_v4   ;;  %5766 = vst [vmem:[#allocation21_spill] sm:$0xff] %v4502_v52  ;;  %v4506_v22 = vpop.eup %3327  ;;  %3345 = vpow2.f32 %v1247_v54  ;;  %v1237_v20 = vmul.f32 1.442695, %v1122_v35 }
 0x1d9   :  { %1433 = vperm.xlu0 %3239, %v4496_v38   ;;  %5767 = vst [vmem:[#allocation30_spill] sm:$0xff] %v4506_v22  ;;  %v4513_v38 = vrot.slane %v4386_v46, %v5768_v36  ;;  %v4517_v53 = vpop.eup %3329  ;;  %3347 = vpow2.f32 %v1229_v43  ;;  %v1233_v36 = vmul.f32 1.442695, %v1120_v56 }
 0x1da   :  { %5769 = vst [vmem:[#allocation34_spill] sm:$0xff] %v4517_v53  ;;  %3349 = vpow2.f32 %v1251_v60 }
 0x1db   :  { %v1131_v3 = vsub.f32 %v4166_v37, %v4513_v38  ;;  %v1133_v6 = vsub.f32 %v4187_v18, %v4513_v38  ;;  %3351 = vpow2.f32 %v1233_v36  ;;  %v1126_v18 = vsub.f32 %v4149_v10, %v4466_v12 }
 0x1dc   :  { %1454 = vperm.xlu1 %3240, %v4477_v49   ;;  %v1130_v12 = vsub.f32 %v4155_v55, %v4488_v62 }
 0x1dd   :  { %1439 = vperm.xlu0 %3239, %v4506_v22   ;;  %v1255_v37 = vmul.f32 1.442695, %v1131_v3  ;;  %v1259_v56 = vmul.f32 1.442695, %v1133_v6  ;;  %v1241_v3 = vmul.f32 1.442695, %v1124_v19 }
 0x1de   :  { %v4521_v24 = vpop.eup %3331  ;;  %v5780_v6 = vld [vmem:[#allocation33_spill] sm:$0xff]  ;;  %v1245_v63 = vmul.f32 1.442695, %v1126_v18 }
 0x1df   :  { %5771 = vst [vmem:[#allocation23_spill] sm:$0xff] %v4521_v24  ;;  %v4527_v46 = vpop.eup %3333  ;;  %3353 = vpow2.f32 %v1255_v37  ;;  %v1128_v37 = vsub.f32 %v5780_v6, %v4488_v62  ;;  %v1253_v6 = vmul.f32 1.442695, %v1130_v12  ;;  %v1873_v12 = vmul.f32 %v4258_v40, %v4207_v0 }
 0x1e0   :  { %1460 = vperm.xlu1 %3240, %v4492_v50   ;;  %5772 = vst [vmem:[#allocation32_spill] sm:$0xff] %v4527_v46  ;;  %v4531_v28 = vpop.eup %3335  ;;  %3355 = vpow2.f32 %v1237_v20 }
 0x1e1   :  { %1445 = vperm.xlu0 %3239, %v4521_v24   ;;  %5774 = vst [vmem:[#allocation28_spill] sm:$0xff] %v4531_v28  ;;  %v4537_v54 = vpop.eup %3337  ;;  %3357 = vpow2.f32 %v1259_v56  ;;  %v1249_v19 = vmul.f32 1.442695, %v1128_v37  ;;  %v1134_v37 = vsub.f32 %v4189_v34, %v4513_v38  ;;  %v1875_v34 = vmul.f32 %v4261_v7, %v4376_v13 }
 0x1e2   :  { %5775 = vst [vmem:[#allocation36_spill] sm:$0xff] %v4537_v54  ;;  %v4541_v43 = vpop.eup %3339  ;;  %3359 = vpow2.f32 %v1241_v3  ;;  %v1132_v3 = vsub.f32 %v4168_v27, %v4513_v38  ;;  %v1879_v7 = vmul.f32 %v4313_v31, %v4376_v13  ;;  %v1883_v31 = vmul.f32 %v4348_v9, %v4376_v13 }
 0x1e3   :  { %5777 = vst [vmem:[#allocation31_spill] sm:$0xff] %v4541_v43  ;;  %v4545_v58 = vpop.eup %3341  ;;  %3361 = vpow2.f32 %v1245_v63  ;;  %v1887_v9 = vmul.f32 %v4366_v51, %v4376_v13  ;;  %v1891_v51 = vmul.f32 %v4384_v1, %v4376_v13  ;;  %v1895_v1 = vmul.f32 %v4401_v32, %v4376_v13 }
 0x1e4   :  { %1466 = vperm.xlu1 %3240, %v4502_v52   ;;  %5778 = vst [vmem:[#allocation61_spill] sm:$0xff] %v4545_v58  ;;  %v4549_v60 = vpop.eup %3343  ;;  %3363 = vpow2.f32 %v1249_v19  ;;  %v1257_v63 = vmul.f32 1.442695, %v1132_v3  ;;  %v1261_v19 = vmul.f32 1.442695, %v1134_v37  ;;  %v1877_v37 = vmul.f32 %v4287_v25, %v4207_v0 }
 0x1e5   :  { %1451 = vperm.xlu0 %3239, %v4531_v28   ;;  %v4555_v36 = vpop.eup %3345  ;;  %3365 = vpow2.f32 %v1253_v6  ;;  %v1881_v25 = vmul.f32 %v4338_v48, %v4207_v0  ;;  %v1885_v52 = vmul.f32 %v4356_v17, %v4207_v0  ;;  %v1889_v17 = vmul.f32 %v4374_v16, %v4207_v0 }
 0x1e6   :  { %5779 = vst [vmem:[#allocation62_spill] sm:$0xff] %v4555_v36  ;;  %3367 = vpow2.f32 %v1257_v63  ;;  %v1884_v16 = vmul.f32 %v4283_v23, %v4209_v14  ;;  %v1888_v23 = vmul.f32 %v4309_v39, %v4209_v14  ;;  %v1890_v32 = vmul.f32 %v4324_v15, %v4360_v33 }
 0x1e7   :  { %3369 = vpow2.f32 %v1261_v19  ;;  %v1892_v39 = vmul.f32 %v4334_v41, %v4209_v14  ;;  %v1894_v15 = vmul.f32 %v4344_v21, %v4360_v33  ;;  %v5789_v21 = vld [vmem:[#allocation55_spill] sm:$0xff] }
 0x1e8   :  { %1472 = vperm.xlu1 %3240, %v4517_v53  }
 0x1e9   :  { %1457 = vperm.xlu0 %3239, %v4541_v43  }
 0x1ec   :  { %1478 = vperm.xlu1 %3240, %v4527_v46  }
 0x1ed   :  { %1463 = vperm.xlu0 %3239, %v4549_v60  }
 0x1f0   :  { %1484 = vperm.xlu1 %3240, %v4537_v54   ;;  %v4559_v54 = vpop.eup %3347 }
 0x1f1   :  { %5781 = vst [vmem:[#allocation33_spill] sm:$0xff] %v4559_v54  ;;  %1469 = vperm.xlu0 %3239, %v4559_v54   ;;  %v4563_v10 = vpop.eup %3349 }
 0x1f2   :  { %5782 = vst [vmem:[#allocation63_spill] sm:$0xff] %v4563_v10  ;;  %v4569_v56 = vpop.eup %3351 }
 0x1f3   :  { %v4573_v18 = vpop.eup %3353 }
 0x1f4   :  { %1490 = vperm.xlu1 %3240, %v4545_v58   ;;  %5783 = vst [vmem:[#allocation64_spill] sm:$0xff] %v4573_v18  ;;  %v4579_v55 = vpop.eup %3355 }
 0x1f5   :  { %1475 = vperm.xlu0 %3239, %v4569_v56   ;;  %v4583_v62 = vpop.eup %3357 }
 0x1f6   :  { %5784 = vst [vmem:[#allocation65_spill] sm:$0xff] %v4583_v62  ;;  %v4589_v27 = vpop.eup %3359 }
 0x1f7   :  { %v4553_v35 = vpop.permute.xlu1 %1331  ;;  %v4597_v58 = vpop.eup %3361 }
 0x1f8   :  { %1496 = vperm.xlu1 %3240, %v4555_v36   ;;  %v4604_v3 = vpop.eup %3363  ;;  %v4606_v6 = vpop.permute.xlu0 %1328 }
 0x1f9   :  { %1481 = vperm.xlu0 %3239, %v4579_v55  }
 0x1fb   :  { %v4567_v20 = vpop.permute.xlu1 %1334 }
 0x1fc   :  { %1502 = vperm.xlu1 %3240, %v4563_v10   ;;  %v4616_v19 = vpop.permute.xlu0 %1355 }
 0x1fd   :  { %1487 = vperm.xlu0 %3239, %v4589_v27  }
 0x1ff   :  { %v4577_v36 = vpop.permute.xlu1 %1337 }
 0x200   :  { %1508 = vperm.xlu1 %3240, %v4573_v18   ;;  %v4631_v46 = vpop.permute.xlu0 %1361 }
 0x201   :  { %1493 = vperm.xlu0 %3239, %v4597_v58  }
 0x203   :  { %v4587_v10 = vpop.permute.xlu1 %1340 }
 0x204   :  { %1514 = vperm.xlu1 %3240, %v4583_v62   ;;  %v4640_v48 = vpop.permute.xlu0 %1367 }
 0x205   :  { %1499 = vperm.xlu0 %3239, %v4604_v3  }
 0x207   :  { %v4595_v18 = vpop.permute.xlu1 %1343 }
 0x208   :  { %2002 = vperm.xlu1 %3240, %v1873_v12   ;;  %v4613_v12 = vpop.eup %3365 }
 0x209   :  { %1505 = vperm.xlu0 %3239, %v4613_v12  }
 0x20b   :  { %v4602_v38 = vpop.permute.xlu1 %1346 }
 0x20c   :  { %2008 = vperm.xlu1 %3240, %v1875_v34   ;;  %v4622_v34 = vpop.eup %3367 }
 0x20d   :  { %5785 = vst [vmem:[#allocation66_spill] sm:$0xff] %v4622_v34  ;;  %1511 = vperm.xlu0 %3239, %v4622_v34  }
 0x20f   :  { %v4611_v63 = vpop.permute.xlu1 %1349 }
 0x210   :  { %2014 = vperm.xlu1 %3240, %v1877_v37   ;;  %v4629_v37 = vpop.eup %3369 }
 0x211   :  { %5786 = vst [vmem:[#allocation67_spill] sm:$0xff] %v4629_v37  ;;  %1517 = vperm.xlu0 %3239, %v4629_v37  }
 0x213   :  { %v4620_v40 = vpop.permute.xlu1 %1352 }
 0x214   :  { %2020 = vperm.xlu1 %3240, %v1879_v7   ;;  %v1874_v7 = vmul.f32 %v4244_v45, %v4360_v33  ;;  %v1878_v45 = vmul.f32 %v4302_v42, %v4360_v33  ;;  %v1882_v42 = vmul.f32 %v4272_v47, %v4360_v33  ;;  %v1886_v47 = vmul.f32 %v4298_v5, %v4360_v33 }
 0x216   :  { %2005 = vperm.xlu0 %3239, %v1874_v7   ;;  %v4654_v7 = vpop.permute.xlu0 %1373 }
 0x217   :  { %v4627_v62 = vpop.permute.xlu1 %1358 }
 0x218   :  { %2026 = vperm.xlu1 %3240, %v1881_v25   ;;  %v1876_v25 = vmul.f32 %v4276_v29, %v4209_v14  ;;  %v1880_v29 = vmul.f32 %v4328_v44, %v4209_v14  ;;  %v1898_v44 = vmul.f32 %v5789_v21, %v4360_v33  ;;  %v5794_v21 = vld [vmem:[#allocation58_spill] sm:$0xff] }
 0x21a   :  { %2011 = vperm.xlu0 %3239, %v1876_v25   ;;  %v4662_v25 = vpop.permute.xlu0 %1379 }
 0x21b   :  { %v4638_v53 = vpop.permute.xlu1 %1364 }
 0x21c   :  { %2032 = vperm.xlu1 %3240, %v1883_v31  }
 0x21e   :  { %2017 = vperm.xlu0 %3239, %v1878_v45   ;;  %v1893_v45 = vmul.f32 %v4396_v30, %v4207_v0  ;;  %v1897_v30 = vmul.f32 %v4408_v11, %v4207_v0  ;;  %v1901_v11 = vmul.f32 %v4421_v26, %v4207_v0  ;;  %v5787_v26 = vld [vmem:[#allocation54_spill] sm:$0xff] }
 0x21f   :  { %v4646_v34 = vpop.permute.xlu1 %1370  ;;  %v1896_v41 = vmul.f32 %v5787_v26, %v4209_v14  ;;  %v5791_v26 = vld [vmem:[#allocation56_spill] sm:$0xff] }
 0x220   :  { %2038 = vperm.xlu1 %3240, %v1885_v52   ;;  %v1900_v37 = vmul.f32 %v5791_v26, %v4209_v14  ;;  %v5795_v26 = vld [vmem:[#allocation59_spill] sm:$0xff] }
 0x222   :  { %2023 = vperm.xlu0 %3239, %v1880_v29   ;;  %v4676_v29 = vpop.permute.xlu0 %1385 }
 0x223   :  { %v4652_v31 = vpop.permute.xlu1 %1376 }
 0x224   :  { %2044 = vperm.xlu1 %3240, %v1887_v9  }
 0x226   :  { %2029 = vperm.xlu0 %3239, %v1882_v42   ;;  %v4684_v42 = vpop.permute.xlu0 %1391 }
 0x227   :  { %v4660_v52 = vpop.permute.xlu1 %1382 }
 0x228   :  { %2050 = vperm.xlu1 %3240, %v1889_v17  }
 0x22a   :  { %2035 = vperm.xlu0 %3239, %v1884_v16   ;;  %v1899_v16 = vmul.f32 %v4412_v61, %v4376_v13  ;;  %v1903_v61 = vmul.f32 %v4426_v2, %v4376_v13  ;;  %v5788_v2 = vld [vmem:[#allocation16_spill] sm:$0xff] }
 0x22b   :  { %v4668_v9 = vpop.permute.xlu1 %1388  ;;  %v1907_v5 = vmul.f32 %v5788_v2, %v4376_v13 }
 0x22c   :  { %2056 = vperm.xlu1 %3240, %v1891_v51  }
 0x22e   :  { %2041 = vperm.xlu0 %3239, %v1886_v47   ;;  %v4698_v47 = vpop.permute.xlu0 %1397 }
 0x22f   :  { %v4674_v17 = vpop.permute.xlu1 %1394 }
 0x230   :  { %2062 = vperm.xlu1 %3240, %v1893_v45  }
 0x232   :  { %2047 = vperm.xlu0 %3239, %v1888_v23   ;;  %v4706_v23 = vpop.permute.xlu0 %1403 }
 0x233   :  { %v4682_v51 = vpop.permute.xlu1 %1400 }
 0x234   :  { %2068 = vperm.xlu1 %3240, %v1895_v1  }
 0x236   :  { %2053 = vperm.xlu0 %3239, %v1890_v32   ;;  %v1905_v32 = vmul.f32 %v4436_v57, %v4207_v0  ;;  %v1909_v57 = vmul.f32 %v4453_v8, %v4207_v0  ;;  %v1913_v8 = vmul.f32 %v4470_v4, %v4207_v0  ;;  %v5798_v4 = vld [vmem:[#allocation35_spill] sm:$0xff] }
 0x237   :  { %v4690_v45 = vpop.permute.xlu1 %1406 }
 0x238   :  { %2074 = vperm.xlu1 %3240, %v1897_v30  }
 0x23a   :  { %2059 = vperm.xlu0 %3239, %v1892_v39   ;;  %v4720_v39 = vpop.permute.xlu0 %1409 }
 0x23b   :  { %v4696_v1 = vpop.permute.xlu1 %1412 }
 0x23c   :  { %2080 = vperm.xlu1 %3240, %v1899_v16  }
 0x23e   :  { %2065 = vperm.xlu0 %3239, %v1894_v15   ;;  %v4728_v15 = vpop.permute.xlu0 %1415 }
 0x23f   :  { %v4704_v30 = vpop.permute.xlu1 %1418 }
 0x240   :  { %2086 = vperm.xlu1 %3240, %v1901_v11  }
 0x242   :  { %2071 = vperm.xlu0 %3239, %v1896_v41   ;;  %v5793_v41 = vld [vmem:[#allocation18_spill] sm:$0xff] }
 0x243   :  { %v4712_v16 = vpop.permute.xlu1 %1424  ;;  %v1911_v2 = vmul.f32 %v5793_v41, %v4376_v13  ;;  %v1915_v41 = vmul.f32 %v4477_v49, %v4376_v13  ;;  %v1910_v49 = vmul.f32 %v4506_v22, %v4360_v33  ;;  %v5804_v22 = vld [vmem:[#allocation7_spill] sm:$0xff] }
 0x244   :  { %2092 = vperm.xlu1 %3240, %v1903_v61  }
 0x246   :  { %2077 = vperm.xlu0 %3239, %v1898_v44   ;;  %v4742_v44 = vpop.permute.xlu0 %1421 }
 0x247   :  { %v4718_v11 = vpop.permute.xlu1 %1430 }
 0x248   :  { %2098 = vperm.xlu1 %3240, %v1905_v32  }
 0x24a   :  { %2083 = vperm.xlu0 %3239, %v1900_v37  }
 0x24b   :  { %v4726_v61 = vpop.permute.xlu1 %1436 }
 0x24c   :  { %5790 = vst [vmem:[#allocation68_spill] sm:$0xff] %v4726_v61  ;;  %2104 = vperm.xlu1 %3240, %v1907_v5   ;;  %v1902_v61 = vmul.f32 %v5794_v21, %v4360_v33  ;;  %v1906_v21 = vmul.f32 %v4481_v59, %v4360_v33 }
 0x24e   :  { %2089 = vperm.xlu0 %3239, %v1902_v61  }
 0x24f   :  { %v4734_v32 = vpop.permute.xlu1 %1442 }
 0x250   :  { %5792 = vst [vmem:[#allocation69_spill] sm:$0xff] %v4734_v32  ;;  %2110 = vperm.xlu1 %3240, %v1909_v57   ;;  %v1904_v32 = vmul.f32 %v5795_v26, %v4209_v14  ;;  %v4750_v37 = vpop.permute.xlu0 %1427  ;;  %v1917_v26 = vmul.f32 %v4492_v50, %v4207_v0 }
 0x252   :  { %2095 = vperm.xlu0 %3239, %v1904_v32  }
 0x253   :  { %v4740_v5 = vpop.permute.xlu1 %1448 }
 0x254   :  { %2116 = vperm.xlu1 %3240, %v1911_v2   ;;  %v4758_v61 = vpop.permute.xlu0 %1433 }
 0x256   :  { %2101 = vperm.xlu0 %3239, %v1906_v21   ;;  %v1912_v21 = vmul.f32 %v4521_v24, %v4209_v14  ;;  %v5806_v24 = vld [vmem:[#allocation8_spill] sm:$0xff] }
 0x257   :  { %v4748_v57 = vpop.permute.xlu1 %1454 }
 0x258   :  { %5796 = vst [vmem:[#allocation70_spill] sm:$0xff] %v4748_v57  ;;  %2122 = vperm.xlu1 %3240, %v1913_v8   ;;  %v1908_v57 = vmul.f32 %v5798_v4, %v4209_v14  ;;  %v4766_v32 = vpop.permute.xlu0 %1439  ;;  %v5802_v4 = vld [vmem:[#allocation5_spill] sm:$0xff] }
 0x25a   :  { %2107 = vperm.xlu0 %3239, %v1908_v57   ;;  %v5803_v57 = vld [vmem:[#allocation6_spill] sm:$0xff] }
 0x25b   :  { %v4756_v2 = vpop.permute.xlu1 %1460  ;;  %v1522_v0 = vrot.slane %v4606_v6, %v5803_v57  ;;  %v1550_v6 = vrot.slane %v4602_v38, %v5804_v22 }
 0x25c   :  { %5797 = vst [vmem:[#allocation71_spill] sm:$0xff] %v4756_v2  ;;  %2128 = vperm.xlu1 %3240, %v1915_v41   ;;  %v4772_v13 = vpop.permute.xlu0 %1445 }
 0x25e   :  { %2113 = vperm.xlu0 %3239, %v1910_v49   ;;  %v1914_v49 = vmul.f32 %v4531_v28, %v4360_v33 }
 0x25f   :  { %v4764_v8 = vpop.permute.xlu1 %1466 }
 0x260   :  { %5799 = vst [vmem:[#allocation72_spill] sm:$0xff] %v4764_v8  ;;  %2134 = vperm.xlu1 %3240, %v1917_v26   ;;  %v4778_v50 = vpop.permute.xlu0 %1451  ;;  %v1526_v26 = vrot.slane %v4553_v35, %v5802_v4 }
 0x262   :  { %2119 = vperm.xlu0 %3239, %v1912_v21   ;;  %v1545_v21 = vrot.slane %v4595_v18, %v5802_v4  ;;  %v1527_v35 = vsel %vm658_vm2, %v1526_v26, %v1522_v0  ;;  %v1920_v18 = vmul.f32 %v4559_v54, %v4209_v14  ;;  %v1564_v0 = vrot.slane %v4616_v19, %v5802_v4 }
 0x263   :  { %v4770_v59 = vpop.permute.xlu1 %1472  ;;  %v1574_v26 = vrot.slane %v4631_v46, %v5806_v24  ;;  %v1579_v19 = vrot.slane %v4638_v53, %v5803_v57  ;;  %v1593_v46 = vrot.slane %v4654_v7, %v5806_v24  ;;  %v1607_v53 = vrot.slane %v4660_v52, %v5804_v22 }
 0x264   :  { %5800 = vst [vmem:[#allocation73_spill] sm:$0xff] %v4770_v59  ;;  %v1531_v59 = vrot.slane %v4567_v20, %v5804_v22  ;;  %v4792_v2 = vpop.permute.xlu0 %1457  ;;  %v1916_v20 = vmul.f32 %v4541_v43, %v4209_v14  ;;  %v1569_v43 = vrot.slane %v4627_v62, %v5804_v22  ;;  %v1555_v62 = vrot.slane %v4611_v63, %v5806_v24 }
 0x265   :  { %v1617_v7 = vrot.slane %v4668_v9, %v5803_v57  ;;  %v1645_v9 = vrot.slane %v4690_v45, %v5804_v22 }
 0x266   :  { %2125 = vperm.xlu0 %3239, %v1914_v49   ;;  %v1532_v28 = vsel %vm665_vm3, %v1531_v59, %v1527_v35  ;;  %v1560_v59 = vrot.slane %v4620_v40, %v5803_v57  ;;  %v1583_v35 = vrot.slane %v4640_v48, %v5802_v4  ;;  %v1588_v40 = vrot.slane %v4646_v34, %v5804_v22 }
 0x267   :  { %v4776_v41 = vpop.permute.xlu1 %1478  ;;  %v1598_v48 = vrot.slane %v4652_v31, %v5803_v57  ;;  %v1621_v34 = vrot.slane %v4684_v42, %v5802_v4  ;;  %v1626_v31 = vrot.slane %v4674_v17, %v5804_v22  ;;  %v1640_v42 = vrot.slane %v4706_v23, %v5802_v4 }
 0x268   :  { %5801 = vst [vmem:[#allocation74_spill] sm:$0xff] %v4776_v41  ;;  %v1536_v41 = vrot.slane %v4577_v36, %v5806_v24  ;;  %v1918_v36 = vmul.f32 %v4549_v60, %v4360_v33  ;;  %v1612_v23 = vrot.slane %v4676_v29, %v5806_v24 }
 0x26a   :  { %v1537_v38 = vsel %vm672_vm4, %v1536_v41, %v1532_v28  ;;  %2131 = vperm.xlu0 %3239, %v1916_v20   ;;  %v1664_v20 = vrot.slane %v4704_v30, %v5804_v22 }
 0x26b   :  { %v4788_v8 = vpop.permute.xlu1 %1484 }
 0x26c   :  { %5805 = vst [vmem:[#allocation5_spill] sm:$0xff] %v4788_v8  ;;  %v1541_v8 = vrot.slane %v4587_v10, %v5803_v57  ;;  %v4817_v10 = vpop.permute.xlu0 %1463 }
 0x26e   :  { %v1546_v54 = vsel %vm658_vm2, %v1545_v21, %v1541_v8  ;;  %v1602_v8 = vrot.slane %v4662_v25, %v5802_v4  ;;  %v1636_v25 = vrot.slane %v4682_v51, %v5803_v57  ;;  %v1584_v21 = vsel %vm658_vm2, %v1583_v35, %v1579_v19  ;;  %2137 = vperm.xlu0 %3239, %v1918_v36  }
 0x26f   :  { %v4808_v49 = vpop.permute.xlu1 %1490  ;;  %v1551_v28 = vsel %vm665_vm3, %v1550_v6, %v1546_v54  ;;  %v1565_v54 = vsel %vm658_vm2, %v1564_v0, %v1560_v59  ;;  %v1655_v6 = vrot.slane %v4696_v1, %v5803_v57  ;;  %v1589_v17 = vsel %vm665_vm3, %v1588_v40, %v1584_v21 }
 0x270   :  { %v4850_v63 = vpop.permute.xlu0 %1469  ;;  %v1570_v52 = vsel %vm665_vm3, %v1569_v43, %v1565_v54  ;;  %v1603_v51 = vsel %vm658_vm2, %v1602_v8, %v1598_v48  ;;  %v1556_v43 = vsel %vm672_vm4, %v1555_v62, %v1551_v28  ;;  %v1659_v0 = vrot.slane %v4728_v15, %v5802_v4 }
 0x271   :  { %v1608_v45 = vsel %vm665_vm3, %v1607_v53, %v1603_v51  ;;  %v1622_v1 = vsel %vm658_vm2, %v1621_v34, %v1617_v7  ;;  %v1575_v59 = vsel %vm672_vm4, %v1574_v26, %v1570_v52  ;;  %v1641_v30 = vsel %vm658_vm2, %v1640_v42, %v1636_v25 }
 0x272   :  { %v1627_v35 = vsel %vm665_vm3, %v1626_v31, %v1622_v1  ;;  %v1631_v15 = vrot.slane %v4698_v47, %v5806_v24  ;;  %v1594_v28 = vsel %vm672_vm4, %v1593_v46, %v1589_v17  ;;  %v1646_v40 = vsel %vm665_vm3, %v1645_v9, %v1641_v30  ;;  %2143 = vperm.xlu0 %3239, %v1920_v18  }
 0x273   :  { %v4841_v41 = vpop.permute.xlu1 %1496  ;;  %v1660_v48 = vsel %vm658_vm2, %v1659_v0, %v1655_v6  ;;  %v1823_v29 = vsel %vm959_vm5, %v1556_v43, %v1537_v38  ;;  %v1650_v26 = vrot.slane %v4720_v39, %v5806_v24  ;;  %v1613_v8 = vsel %vm672_vm4, %v1612_v23, %v1608_v45 }
 0x274   :  { %v4876_v19 = vpop.permute.xlu0 %1475  ;;  %v1665_v62 = vsel %vm665_vm3, %v1664_v20, %v1660_v48  ;;  %v1824_v53 = vsel %vm961_vm6, %v1575_v59, %v1823_v29  ;;  %v1669_v47 = vrot.slane %v4742_v44, %v5806_v24  ;;  %v1632_v46 = vsel %vm672_vm4, %v1631_v15, %v1627_v35 }
 0x275   :  { %v1922_v7 = vmul.f32 %v4569_v56, %v4360_v33  ;;  %v1825_v38 = vsel %vm963_vm7, %v1594_v28, %v1824_v53  ;;  %v1651_v39 = vsel %vm672_vm4, %v1650_v26, %v1646_v40  ;;  %v1924_v25 = vmul.f32 %v4579_v55, %v4209_v14  ;;  %v5807_v28 = vld [vmem:[#allocation66_spill] sm:$0xff] }
 0x276   :  { %v1670_v34 = vsel %vm672_vm4, %v1669_v47, %v1665_v62  ;;  %v1826_v31 = vsel %vm965_vm8, %v1613_v8, %v1825_v38  ;;  %v1926_v42 = vmul.f32 %v4589_v27, %v4360_v33  ;;  %v1928_v43 = vmul.f32 %v4597_v58, %v4209_v14  ;;  %v5808_v47 = vld [vmem:[#allocation68_spill] sm:$0xff] }
 0x277   :  { %v4869_v36 = vpop.permute.xlu1 %1502  ;;  %2149 = vperm.xlu0 %3239, %v1922_v7   ;;  %v1827_v44 = vsel %vm967_vm9, %v1632_v46, %v1826_v31  ;;  %v1930_v1 = vmul.f32 %v4604_v3, %v4360_v33  ;;  %v1932_v35 = vmul.f32 %v4613_v12, %v4209_v14  ;;  %v1934_v40 = vmul.f32 %v5807_v28, %v4360_v33  ;;  %v5809_v7 = vld [vmem:[#allocation69_spill] sm:$0xff] }
 0x278   :  { %v4897_v54 = vpop.permute.xlu0 %1481  ;;  %v1828_v21 = vsel %vm969_vm10, %v1651_v39, %v1827_v44  ;;  %v1674_v62 = vrot.slane %v4712_v16, %v5803_v57  ;;  %v1683_v53 = vrot.slane %v4718_v11, %v5804_v22  ;;  %v1693_v46 = vrot.slane %v5808_v47, %v5803_v57 }
 0x279   :  { %v1829_v6 = vsel %vm971_vm11, %v1670_v34, %v1828_v21  ;;  %v1678_v33 = vrot.slane %v4750_v37, %v5802_v4  ;;  %v1702_v38 = vrot.slane %v5809_v7, %v5804_v22  ;;  %v1697_v34 = vrot.slane %v4766_v32, %v5802_v4  ;;  %v5814_v7 = vld [vmem:[#allocation74_spill] sm:$0xff] }
 0x27a   :  { %v1839_v51 = vsel %vm982_vm12, %v1829_v6, 0.0  ;;  %v1688_v37 = vrot.slane %v4758_v61, %v5806_v24  ;;  %v5810_v6 = vld [vmem:[#allocation70_spill] sm:$0xff] }
 0x27b   :  { %v4894_v18 = vpop.permute.xlu1 %1508  ;;  %2155 = vperm.xlu0 %3239, %v1924_v25   ;;  %v1679_v16 = vsel %vm658_vm2, %v1678_v33, %v1674_v62  ;;  %v1698_v44 = vsel %vm658_vm2, %v1697_v34, %v1693_v46  ;;  %v1712_v25 = vrot.slane %v4740_v5, %v5803_v57  ;;  %v5813_v46 = vld [vmem:[#allocation73_spill] sm:$0xff] }
 0x27c   :  { %v4908_v9 = vpop.permute.xlu0 %1487  ;;  %v1684_v11 = vsel %vm665_vm3, %v1683_v53, %v1679_v16  ;;  %v1703_v21 = vsel %vm665_vm3, %v1702_v38, %v1698_v44  ;;  %v5812_v53 = vld [vmem:[#allocation72_spill] sm:$0xff]  ;;  %v1759_v38 = vrot.slane %v5814_v7, %v5804_v22  ;;  %v5815_v34 = vld [vmem:[#allocation5_spill] sm:$0xff]  ;;  %v1726_v44 = vrot.slane %v4792_v2, %v5806_v24 }
 0x27d   :  { %v1689_v5 = vsel %vm672_vm4, %v1688_v37, %v1684_v11  ;;  %v1740_v47 = vrot.slane %v5812_v53, %v5804_v22  ;;  %v1769_v16 = vrot.slane %v5815_v34, %v5803_v57  ;;  %v1778_v37 = vrot.slane %v4808_v49, %v5804_v22 }
 0x27e   :  { %v1807_v2 = vrot.slane %v4894_v18, %v5803_v57 }
 0x27f   :  { %v4905_v52 = vpop.permute.xlu1 %1514  ;;  %2161 = vperm.xlu0 %3239, %v1926_v42   ;;  %v1721_v42 = vrot.slane %v5810_v6, %v5804_v22 }
 0x280   :  { %v4916_v20 = vpop.permute.xlu0 %1493 }
 0x283   :  { %v4913_v17 = vpop.permute.xlu1 %2002  ;;  %2167 = vperm.xlu0 %3239, %v1928_v43   ;;  %v1716_v43 = vrot.slane %v4778_v50, %v5802_v4  ;;  %v1735_v50 = vrot.slane %v4817_v10, %v5802_v4  ;;  %v1788_v10 = vrot.slane %v4841_v41, %v5803_v57 }
 0x284   :  { %1840 = vadd.xlane.f32.xlu1 %v1839_v51  ;;  %v4922_v45 = vpop.permute.xlu0 %1499  ;;  %v1707_v51 = vrot.slane %v4772_v13, %v5806_v24  ;;  %v1750_v13 = vrot.slane %v5813_v46, %v5803_v57 }
 0x285   :  { %v1717_v62 = vsel %vm658_vm2, %v1716_v43, %v1712_v25  ;;  %v1754_v25 = vrot.slane %v4876_v19, %v5802_v4  ;;  %v1792_v41 = vrot.slane %v4922_v45, %v5802_v4  ;;  %v1816_v43 = vrot.slane %v4905_v52, %v5804_v22 }
 0x286   :  { %v1722_v33 = vsel %vm665_vm3, %v1721_v42, %v1717_v62  ;;  %v1773_v42 = vrot.slane %v4908_v9, %v5802_v4  ;;  %v1764_v62 = vrot.slane %v4897_v54, %v5806_v24 }
 0x287   :  { %v4920_v0 = vpop.permute.xlu1 %2008  ;;  %2173 = vperm.xlu0 %3239, %v1930_v1   ;;  %v1755_v49 = vsel %vm658_vm2, %v1754_v25, %v1750_v13  ;;  %v1793_v53 = vsel %vm658_vm2, %v1792_v41, %v1788_v10 }
 0x288   :  { %v4928_v59 = vpop.permute.xlu0 %1505  ;;  %v1760_v9 = vsel %vm665_vm3, %v1759_v38, %v1755_v49 }
 0x289   :  { %v1765_v54 = vsel %vm672_vm4, %v1764_v62, %v1760_v9 }
 0x28b   :  { %v4926_v23 = vpop.permute.xlu1 %2014  ;;  %2179 = vperm.xlu0 %3239, %v1932_v35   ;;  %v5811_v35 = vld [vmem:[#allocation71_spill] sm:$0xff] }
 0x28c   :  { %v4934_v15 = vpop.permute.xlu0 %1511  ;;  %v1731_v61 = vrot.slane %v5811_v35, %v5803_v57  ;;  %v1745_v35 = vrot.slane %v4850_v63, %v5806_v24  ;;  %v1783_v63 = vrot.slane %v4916_v20, %v5806_v24 }
 0x28d   :  { %v1811_v18 = vrot.slane %v4934_v15, %v5802_v4 }
 0x28e   :  { %v1736_v6 = vsel %vm658_vm2, %v1735_v50, %v1731_v61  ;;  %v1727_v61 = vsel %vm672_vm4, %v1726_v44, %v1722_v33  ;;  %v1802_v33 = vrot.slane %v4928_v59, %v5806_v24 }
 0x28f   :  { %v4932_v30 = vpop.permute.xlu1 %2020  ;;  %2185 = vperm.xlu0 %3239, %v1934_v40   ;;  %v1708_v40 = vsel %vm672_vm4, %v1707_v51, %v1703_v21  ;;  %v1797_v51 = vrot.slane %v4869_v36, %v5804_v22  ;;  %v1741_v19 = vsel %vm665_vm3, %v1740_v47, %v1736_v6  ;;  %v1774_v36 = vsel %vm658_vm2, %v1773_v42, %v1769_v16 }
 0x290   :  { %v4940_v29 = vpop.permute.xlu0 %1517  ;;  %v1779_v45 = vsel %vm665_vm3, %v1778_v37, %v1774_v36  ;;  %v1746_v47 = vsel %vm672_vm4, %v1745_v35, %v1741_v19  ;;  %v1812_v13 = vsel %vm658_vm2, %v1811_v18, %v1807_v2  ;;  %v1830_v50 = vsel %vm959_vm5, %v1708_v40, %v1689_v5 }
 0x291   :  { %v1798_v46 = vsel %vm665_vm3, %v1797_v51, %v1793_v53  ;;  %v1817_v7 = vsel %vm665_vm3, %v1816_v43, %v1812_v13  ;;  %v1831_v38 = vsel %vm961_vm6, %v1727_v61, %v1830_v50  ;;  %v1784_v34 = vsel %vm672_vm4, %v1783_v63, %v1779_v45  ;;  %v5816_v50 = vld [vmem:[#allocation67_spill] sm:$0xff] }
 0x292   :  { %v1821_v20 = vrot.slane %v4940_v29, %v5806_v24  ;;  %v1832_v16 = vsel %vm963_vm7, %v1746_v47, %v1831_v38  ;;  %v1803_v25 = vsel %vm672_vm4, %v1802_v33, %v1798_v46  ;;  %v2196_v35 = vrot.slane %v4913_v17, %v5803_v57 }
 0x293   :  { %v4938_v48 = vpop.permute.xlu1 %2026  ;;  %v1833_v40 = vsel %vm965_vm8, %v1765_v54, %v1832_v16  ;;  %v2205_v36 = vrot.slane %v4920_v0, %v5804_v22  ;;  %v2215_v45 = vrot.slane %v4926_v23, %v5803_v57  ;;  %v2224_v47 = vrot.slane %v4932_v30, %v5804_v22 }
 0x294   :  { %v4944_v8 = vpop.permute.xlu0 %2005  ;;  %v1822_v5 = vsel %vm672_vm4, %v1821_v20, %v1817_v7  ;;  %v1834_v59 = vsel %vm967_vm9, %v1784_v34, %v1833_v40  ;;  %v2234_v17 = vrot.slane %v4938_v48, %v5803_v57  ;;  %v1936_v54 = vmul.f32 %v5816_v50, %v4209_v14 }
 0x295   :  { %v1835_v37 = vsel %vm969_vm10, %v1803_v25, %v1834_v59  ;;  %v2200_v18 = vrot.slane %v4944_v8, %v5802_v4 }
 0x296   :  { %v1836_v42 = vsel %vm971_vm11, %v1822_v5, %v1835_v37 }
 0x297   :  { %v4942_v26 = vpop.permute.xlu1 %2032  ;;  %v1842_v51 = vsel %vm982_vm12, %v1836_v42, 0.0  ;;  %v2201_v62 = vsel %vm658_vm2, %v2200_v18, %v2196_v35 }
 0x298   :  { %v4960_v31 = vpop.permute.xlu0 %2011  ;;  %v2206_v53 = vsel %vm665_vm3, %v2205_v36, %v2201_v62  ;;  %v2243_v63 = vrot.slane %v4942_v26, %v5804_v22 }
 0x299   :  { %v2210_v0 = vrot.slane %v4960_v31, %v5806_v24 }
 0x29b   :  { %v4956_v39 = vpop.permute.xlu1 %2038  ;;  %v2211_v30 = vsel %vm672_vm4, %v2210_v0, %v2206_v53 }
 0x29c   :  { %v4978_v1 = vpop.permute.xlu0 %2017  ;;  %v2253_v31 = vrot.slane %v4956_v39, %v5803_v57 }
 0x29d   :  { %v2219_v8 = vrot.slane %v4978_v1, %v5802_v4 }
 0x29f   :  { %v4972_v32 = vpop.permute.xlu1 %2044  ;;  %v2220_v48 = vsel %vm658_vm2, %v2219_v8, %v2215_v45 }
 0x2a0   :  { %v5006_v21 = vpop.permute.xlu0 %2023  ;;  %v2262_v1 = vrot.slane %v4972_v32, %v5804_v22  ;;  %v2225_v33 = vsel %vm665_vm3, %v2224_v47, %v2220_v48 }
 0x2a1   :  { %v2229_v26 = vrot.slane %v5006_v21, %v5806_v24 }
 0x2a3   :  { %v4996_v11 = vpop.permute.xlu1 %2050 }
 0x2a4   :  { %v2030_v52 = vpop.permute.xlu0 %2029  ;;  %v2272_v14 = vrot.slane %v4996_v11, %v5803_v57  ;;  %v2230_v11 = vsel %vm672_vm4, %v2229_v26, %v2225_v33  ;;  %v5817_v33 = vld [vmem:[#allocation57_spill] sm:$0xff] }
 0x2a5   :  { %v2238_v23 = vrot.slane %v2030_v52, %v5802_v4  ;;  %v2497_v53 = vsel %vm959_vm5, %v2230_v11, %v2211_v30  ;;  %v5824_v11 = vld [vmem:[#allocation62_spill] sm:$0xff] }
 0x2a7   :  { %v5037_v15 = vpop.permute.xlu1 %2056  ;;  %v2239_v52 = vsel %vm658_vm2, %v2238_v23, %v2234_v17 }
 0x2a8   :  { %v2036_v44 = vpop.permute.xlu0 %2035  ;;  %v2244_v38 = vsel %vm665_vm3, %v2243_v63, %v2239_v52  ;;  %v2281_v39 = vrot.slane %v5037_v15, %v5804_v22  ;;  %v5818_v52 = vld [vmem:[#allocation21_spill] sm:$0xff] }
 0x2a9   :  { %v2248_v34 = vrot.slane %v2036_v44, %v5806_v24 }
 0x2ab   :  { %v2063_v10 = vpop.permute.xlu1 %2062  ;;  %v2249_v37 = vsel %vm672_vm4, %v2248_v34, %v2244_v38  ;;  %v5820_v38 = vld [vmem:[#allocation34_spill] sm:$0xff] }
 0x2ac   :  { %v2042_v6 = vpop.permute.xlu0 %2041  ;;  %v2291_v32 = vrot.slane %v2063_v10, %v5803_v57  ;;  %v2498_v17 = vsel %vm961_vm6, %v2249_v37, %v2497_v53 }
 0x2ad   :  { %v2257_v7 = vrot.slane %v2042_v6, %v5802_v4 }
 0x2ae   :  { %1843 = vadd.xlane.f32.xlu0 %v1842_v51 }
 0x2af   :  { %v2069_v2 = vpop.permute.xlu1 %2068  ;;  %v2258_v5 = vsel %vm658_vm2, %v2257_v7, %v2253_v31  ;;  %v5819_v7 = vld [vmem:[#allocation37_spill] sm:$0xff] }
 0x2b0   :  { %v2048_v29 = vpop.permute.xlu0 %2047  ;;  %v2300_v16 = vrot.slane %v2069_v2, %v5804_v22  ;;  %v2263_v44 = vsel %vm665_vm3, %v2262_v1, %v2258_v5  ;;  %v1929_v5 = vmul.f32 %v5824_v11, %v5819_v7 }
 0x2b1   :  { %v2267_v42 = vrot.slane %v2048_v29, %v5806_v24 }
 0x2b3   :  { %v2075_v49 = vpop.permute.xlu1 %2074  ;;  %v2268_v18 = vsel %vm672_vm4, %v2267_v42, %v2263_v44  ;;  %v5827_v44 = vld [vmem:[#allocation65_spill] sm:$0xff] }
 0x2b4   :  { %v2054_v19 = vpop.permute.xlu0 %2053  ;;  %v2310_v25 = vrot.slane %v2075_v49, %v5803_v57  ;;  %v2499_v63 = vsel %vm963_vm7, %v2268_v18, %v2498_v17 }
 0x2b5   :  { %v2276_v21 = vrot.slane %v2054_v19, %v5802_v4 }
 0x2b7   :  { %v2081_v9 = vpop.permute.xlu1 %2080  ;;  %v2277_v10 = vsel %vm658_vm2, %v2276_v21, %v2272_v14  ;;  %v1919_v14 = vmul.f32 %v5818_v52, %v5817_v33  ;;  %v5822_v21 = vld [vmem:[#allocation36_spill] sm:$0xff] }
 0x2b8   :  { %v2060_v41 = vpop.permute.xlu0 %2059  ;;  %v2319_v59 = vrot.slane %v2081_v9, %v5804_v22  ;;  %v2282_v51 = vsel %vm665_vm3, %v2281_v39, %v2277_v10  ;;  %v1921_v39 = vmul.f32 %v5820_v38, %v5819_v7  ;;  %v1935_v10 = vmul.f32 %v5827_v44, %v5817_v33 }
 0x2b9   :  { %v2286_v49 = vrot.slane %v2060_v41, %v5806_v24 }
 0x2bb   :  { %v2087_v46 = vpop.permute.xlu1 %2086  ;;  %v2287_v47 = vsel %vm672_vm4, %v2286_v49, %v2282_v51 }
 0x2bc   :  { %v2066_v43 = vpop.permute.xlu0 %2065  ;;  %v2329_v19 = vrot.slane %v2087_v46, %v5803_v57 }
 0x2bd   :  { %v2295_v40 = vrot.slane %v2066_v43, %v5802_v4 }
 0x2bf   :  { %v2093_v15 = vpop.permute.xlu1 %2092  ;;  %v2296_v2 = vsel %vm658_vm2, %v2295_v40, %v2291_v32  ;;  %v5821_v32 = vld [vmem:[#allocation32_spill] sm:$0xff]  ;;  %v5825_v40 = vld [vmem:[#allocation63_spill] sm:$0xff] }
 0x2c0   :  { %v2072_v61 = vpop.permute.xlu0 %2071  ;;  %v2301_v35 = vsel %vm665_vm3, %v2300_v16, %v2296_v2  ;;  %v2338_v36 = vrot.slane %v2093_v15, %v5804_v22  ;;  %v1923_v34 = vmul.f32 %v5821_v32, %v5817_v33  ;;  %v5823_v16 = vld [vmem:[#allocation61_spill] sm:$0xff]  ;;  %v5826_v15 = vld [vmem:[#allocation64_spill] sm:$0xff] }
 0x2c1   :  { %v2305_v62 = vrot.slane %v2072_v61, %v5806_v24  ;;  %v1933_v37 = vmul.f32 %v5826_v15, %v5819_v7 }
 0x2c3   :  { %v2306_v0 = vsel %vm672_vm4, %v2305_v62, %v2301_v35 }
 0x2c4   :  { %v2078_v13 = vpop.permute.xlu0 %2077  ;;  %2191 = vperm.xlu0 %3239, %v1936_v54   ;;  %v2500_v54 = vsel %vm965_vm8, %v2287_v47, %v2499_v63 }
 0x2c5   :  { %v2314_v6 = vrot.slane %v2078_v13, %v5802_v4  ;;  %v2501_v30 = vsel %vm967_vm9, %v2306_v0, %v2500_v54 }
 0x2c7   :  { %v2315_v9 = vsel %vm658_vm2, %v2314_v6, %v2310_v25  ;;  %v1927_v25 = vmul.f32 %v5823_v16, %v5817_v33  ;;  %v5157_v6 = vld [vmem:[%s5540_s0 + $0x1] ss:$0 sm:$0xff]  ;;  %s3399_s0 = smov [#allocation2]  }
 0x2c8   :  { %v2084_v20 = vpop.permute.xlu0 %2083  ;;  %v2320_v45 = vsel %vm665_vm3, %v2319_v59, %v2315_v9  ;;  %v1931_v59 = vmul.f32 %v5825_v40, %v5817_v33  ;;  %s3226_s8 = sshll.u32 %s3399_s0, 4  ;;  %s3227_s8 = int_to_ptr.vmem [resolvable:$true] %s3226_s8 }
 0x2c9   :  { %v2324_v41 = vrot.slane %v2084_v20, %v5806_v24  ;;  %v1925_v20 = vmul.f32 %v5822_v21, %v5819_v7  ;;  %s3375_s9 = scalar_lea.vmem %s3227_s8, 32  ;;  %p3380_p1 = scmp.lt.s32.totalorder %s3227_s8, %s3227_s8 }
 0x2ca   :  { %p3376_p0 = scmp.ne.s32.totalorder %s3227_s8, %s3375_s9  ;;  %p3381_p2 = scmp.lt.s32.totalorder %s3375_s9, %s3375_s9 }
 0x2cb   :  { %v2325_v23 = vsel %vm672_vm4, %v2324_v41, %v2320_v45 }
 0x2cc   :  { %v2090_v43 = vpop.permute.xlu0 %2089  ;;  %v2502_v31 = vsel %vm969_vm10, %v2325_v23, %v2501_v30  ;;  %p3382_p3 = por %p3381_p2, %p3380_p1 }
 0x2cd   :  { %v2333_v29 = vrot.slane %v2090_v43, %v5802_v4 }
 0x2ce   :  { %p3383_p4 = pnand %p3382_p3, %p3376_p0 }
 0x2cf   :  { %v2334_v8 = vsel %vm658_vm2, %v2333_v29, %v2329_v19  ;;  %v2099_v19 = vpop.permute.xlu1 %2098 }
 0x2d0   :  { %v2096_v46 = vpop.permute.xlu0 %2095  ;;  %v2339_v61 = vsel %vm665_vm3, %v2338_v36, %v2334_v8 }
 0x2d1   :  { %v2343_v13 = vrot.slane %v2096_v46, %v5806_v24 }
 0x2d3   :  { %v2344_v48 = vsel %vm672_vm4, %v2343_v13, %v2339_v61  ;;  %v2105_v43 = vpop.permute.xlu1 %2104 }
 0x2d4   :  { %v2503_v1 = vsel %vm971_vm11, %v2344_v48, %v2502_v31  ;;  %v2102_v42 = vpop.permute.xlu0 %2101  ;;  %v2348_v48 = vrot.slane %v2099_v19, %v5803_v57  ;;  %v2357_v31 = vrot.slane %v2105_v43, %v5804_v22 }
 0x2d5   :  { %v2513_v26 = vsel %vm982_vm12, %v2503_v1, 0.0  ;;  %v2352_v1 = vrot.slane %v2102_v42, %v5802_v4 }
 0x2d6   :  { %2514 = vadd.xlane.f32.xlu1 %v2513_v26 }
 0x2d7   :  { %v2111_v9 = vpop.permute.xlu1 %2110 }
 0x2d8   :  { %v2108_v51 = vpop.permute.xlu0 %2107  ;;  %v2367_v7 = vrot.slane %v2111_v9, %v5803_v57 }
 0x2db   :  { %v2117_v18 = vpop.permute.xlu1 %2116 }
 0x2dc   :  { %v2114_v2 = vpop.permute.xlu0 %2113 }
 0x2df   :  { %v2123_v29 = vpop.permute.xlu1 %2122 }
 0x2e0   :  { %v5161_v49 = vpop.permute.xlu0 %2119 }
 0x2e3   :  { %v2129_v53 = vpop.permute.xlu1 %2128 }
 0x2e4   :  { %v2126_v35 = vpop.permute.xlu0 %2125  ;;  %v2395_v42 = vrot.slane %v2129_v53, %v5804_v22 }
 0x2e5   :  { %v2390_v43 = vrot.slane %v2126_v35, %v5802_v4 }
 0x2e7   :  { %2140 = vperm.xlu1 %3240, %v1919_v14   ;;  %v2135_v41 = vpop.permute.xlu1 %2134  ;;  %v2353_v14 = vsel %vm658_vm2, %v2352_v1, %v2348_v48 }
 0x2e8   :  { %v5163_v36 = vpop.permute.xlu0 %2131  ;;  %v2405_v19 = vrot.slane %v2135_v41, %v5803_v57 }
 0x2eb   :  { %2146 = vperm.xlu1 %3240, %v1921_v39   ;;  %v2358_v39 = vsel %vm665_vm3, %v2357_v31, %v2353_v14 }
 0x2ec   :  { %v2138_v62 = vpop.permute.xlu0 %2137 }
 0x2ed   :  { %v2409_v48 = vrot.slane %v2138_v62, %v5802_v4 }
 0x2ef   :  { %2152 = vperm.xlu1 %3240, %v1923_v34   ;;  %v2376_v34 = vrot.slane %v2117_v18, %v5804_v22 }
 0x2f0   :  { %v5165_v45 = vpop.permute.xlu0 %2143 }
 0x2f3   :  { %2158 = vperm.xlu1 %3240, %v1925_v20   ;;  %v2362_v20 = vrot.slane %v2108_v51, %v5806_v24 }
 0x2f4   :  { %v2150_v47 = vpop.permute.xlu0 %2149 }
 0x2f5   :  { %v2428_v35 = vrot.slane %v2150_v47, %v5802_v4 }
 0x2f7   :  { %2164 = vperm.xlu1 %3240, %v1927_v25   ;;  %v2371_v25 = vrot.slane %v2114_v2, %v5802_v4 }
 0x2f8   :  { %v5169_v0 = vpop.permute.xlu0 %2155 }
 0x2fb   :  { %2170 = vperm.xlu1 %3240, %v1929_v5  }
 0x2fc   :  { %v2162_v63 = vpop.permute.xlu0 %2161 }
 0x2ff   :  { %2176 = vperm.xlu1 %3240, %v1931_v59   ;;  %v2386_v59 = vrot.slane %v2123_v29, %v5803_v57  ;;  %v2381_v29 = vrot.slane %v5161_v49, %v5806_v24  ;;  %v2447_v49 = vrot.slane %v2162_v63, %v5802_v4 }
 0x300   :  { %v5173_v23 = vpop.permute.xlu0 %2167 }
 0x301   :  { %v2391_v41 = vsel %vm658_vm2, %v2390_v43, %v2386_v59 }
 0x303   :  { %2182 = vperm.xlu1 %3240, %v1933_v37   ;;  %v2363_v37 = vsel %vm672_vm4, %v2362_v20, %v2358_v39  ;;  %v2419_v20 = vrot.slane %v5165_v45, %v5806_v24 }
 0x304   :  { %v2174_v54 = vpop.permute.xlu0 %2173 }
 0x307   :  { %2188 = vperm.xlu1 %3240, %v1935_v10   ;;  %v2372_v10 = vsel %vm658_vm2, %v2371_v25, %v2367_v7  ;;  %v2410_v7 = vsel %vm658_vm2, %v2409_v48, %v2405_v19 }
 0x308   :  { %v2180_v33 = vpop.permute.xlu0 %2179  ;;  %v2377_v9 = vsel %vm665_vm3, %v2376_v34, %v2372_v10 }
 0x309   :  { %v2382_v34 = vsel %vm672_vm4, %v2381_v29, %v2377_v9 }
 0x30a   :  { %v2504_v9 = vsel %vm959_vm5, %v2382_v34, %v2363_v37 }
 0x30b   :  { %2531 = vbcast.lane.b32.xlu1 %v5157_v6, 264 }
 0x30c   :  { %v2186_v18 = vpop.permute.xlu0 %2185 }
 0x30d   :  { %v5167_v17 = vpop.xlane.xlu1 %1840  ;;  %v2485_v48 = vrot.slane %v2186_v18, %v5802_v4 }
 0x30f   :  { %2535 = vbcast.lane.b32.xlu1 %v5157_v6, 272 }
 0x337   :  { %v1844_v39 = vpop.xlane.xlu0 %1843 }
 0x338   :  { %3371 = vrcp.f32 %v1844_v39 }
 0x339   :  { %3373 = vrcp.f32 %v5167_v17 }
 0x35f   :  { %v5171_v8 = vpop.xlane.xlu1 %2514 }
 0x363   :  { %v2141_v46 = vpop.permute.xlu1 %2140 }
 0x364   :  { %v2414_v51 = vrot.slane %v2141_v46, %v5804_v22 }
 0x366   :  { %v2415_v47 = vsel %vm665_vm3, %v2414_v51, %v2410_v7  ;;  %v2476_v51 = vrot.slane %v2180_v33, %v5806_v24 }
 0x367   :  { %v2147_v61 = vpop.permute.xlu1 %2146  ;;  %v2420_v19 = vsel %vm672_vm4, %v2419_v20, %v2415_v47 }
 0x368   :  { %v2424_v2 = vrot.slane %v2147_v61, %v5803_v57  ;;  %v2396_v61 = vsel %vm665_vm3, %v2395_v42, %v2391_v41  ;;  %v2457_v42 = vrot.slane %v5173_v23, %v5806_v24 }
 0x36b   :  { %v2153_v13 = vpop.permute.xlu1 %2152 }
 0x36c   :  { %v2433_v31 = vrot.slane %v2153_v13, %v5804_v22  ;;  %v2400_v13 = vrot.slane %v5163_v36, %v5806_v24  ;;  %v2438_v36 = vrot.slane %v5169_v0, %v5806_v24 }
 0x36e   :  { %v2401_v59 = vsel %vm672_vm4, %v2400_v13, %v2396_v61  ;;  %v5828_v13 = vld [vmem:[#allocation38_spill] sm:$0xff] }
 0x36f   :  { %v2159_v30 = vpop.permute.xlu1 %2158  ;;  %v2505_v29 = vsel %vm961_vm6, %v2401_v59, %v2504_v9 }
 0x370   :  { %v2443_v53 = vrot.slane %v2159_v30, %v5803_v57  ;;  %v2466_v30 = vrot.slane %v2174_v54, %v5802_v4 }
 0x372   :  { %v2448_v63 = vsel %vm658_vm2, %v2447_v49, %v2443_v53  ;;  %v2506_v53 = vsel %vm963_vm7, %v2420_v19, %v2505_v29  ;;  %v5835_v29 = vld [vmem:[#allocation48_spill] sm:$0xff] }
 0x373   :  { %v2165_v26 = vpop.permute.xlu1 %2164 }
 0x374   :  { %v2452_v14 = vrot.slane %v2165_v26, %v5804_v22  ;;  %v2429_v26 = vsel %vm658_vm2, %v2428_v35, %v2424_v2  ;;  %v2192_v2 = vpop.permute.xlu0 %2191 }
 0x375   :  { %v2434_v25 = vsel %vm665_vm3, %v2433_v31, %v2429_v26  ;;  %v2495_v37 = vrot.slane %v2192_v2, %v5806_v24  ;;  %v5251_v26 = vpop.eup %3371  ;;  %v5834_v2 = vld [vmem:[#allocation50_spill] sm:$0xff] }
 0x376   :  { %v2453_v54 = vsel %vm665_vm3, %v2452_v14, %v2448_v63  ;;  %v2439_v0 = vsel %vm672_vm4, %v2438_v36, %v2434_v25  ;;  %v5829_v25 = vld [vmem:[#allocation39_spill] sm:$0xff]  ;;  %v5830_v36 = vld [vmem:[#allocation42_spill] sm:$0xff] }
 0x377   :  { %v2171_v5 = vpop.permute.xlu1 %2170  ;;  %v2458_v31 = vsel %vm672_vm4, %v2457_v42, %v2453_v54  ;;  %v2507_v35 = vsel %vm965_vm8, %v2439_v0, %v2506_v53  ;;  %v5837_v53 = vld [vmem:[#allocation52_spill] sm:$0xff] }
 0x378   :  { %v2462_v46 = vrot.slane %v2171_v5, %v5803_v57 }
 0x37a   :  { %v2467_v10 = vsel %vm658_vm2, %v2466_v30, %v2462_v46  ;;  %v2508_v46 = vsel %vm967_vm9, %v2458_v31, %v2507_v35  ;;  %v5836_v31 = vld [vmem:[#allocation41_spill] sm:$0xff] }
 0x37b   :  { %v2177_v1 = vpop.permute.xlu1 %2176 }
 0x37c   :  { %v2471_v62 = vrot.slane %v2177_v1, %v5804_v22 }
 0x37e   :  { %v2472_v45 = vsel %vm665_vm3, %v2471_v62, %v2467_v10  ;;  %v5831_v10 = vld [vmem:[#allocation40_spill] sm:$0xff] }
 0x37f   :  { %v2183_v5 = vpop.permute.xlu1 %2182  ;;  %v2477_v41 = vsel %vm672_vm4, %v2476_v51, %v2472_v45  ;;  %v5832_v45 = vld [vmem:[#allocation46_spill] sm:$0xff] }
 0x380   :  { %v2481_v43 = vrot.slane %v2183_v5, %v5803_v57  ;;  %v2509_v61 = vsel %vm969_vm10, %v2477_v41, %v2508_v46  ;;  %v5258_v5 = vpop.eup %3373  ;;  %v5838_v41 = vld [vmem:[#allocation43_spill] sm:$0xff] }
 0x381   :  { %v2519_v59 = vmul.f32 %v5258_v5, %v5171_v8  ;;  %v5833_v8 = vld [vmem:[#allocation44_spill] sm:$0xff] }
 0x382   :  { %v2486_v33 = vsel %vm658_vm2, %v2485_v48, %v2481_v43 }
 0x383   :  { %v2189_v23 = vpop.permute.xlu1 %2188  ;;  %v3198_v19 = vrot.slane %v2519_v59, %v5803_v57  ;;  %v5846_v59 = vld [vmem:[#allocation51_spill] sm:$0xff] }
 0x384   :  { %v2490_v1 = vrot.slane %v2189_v23, %v5804_v22 }
 0x386   :  { %v2491_v14 = vsel %vm665_vm3, %v2490_v1, %v2486_v33  ;;  %v5839_v33 = vld [vmem:[#allocation9_spill] sm:$0xff] }
 0x387   :  { %v2496_v18 = vsel %vm672_vm4, %v2495_v37, %v2491_v14  ;;  %v5245_v62 = vpop.permute.xlu1 %2531  ;;  %v5840_v14 = vld [vmem:[#allocation45_spill] sm:$0xff] }
 0x388   :  { %v2510_v7 = vsel %vm971_vm11, %v2496_v18, %v2509_v61  ;;  %v2546_v30 = vmul.f32 %v5828_v13, %v5245_v62  ;;  %v2550_v43 = vmul.f32 %v5832_v45, %v5245_v62  ;;  %v2554_v23 = vmul.f32 %v5836_v31, %v5245_v62  ;;  %v5841_v18 = vld [vmem:[#allocation10_spill] sm:$0xff]  ;;  %v5843_v13 = vld [vmem:[#allocation11_spill] sm:$0xff]  ;;  %v5854_v31 = vld [vmem:[#allocation56_spill] sm:$0xff] }
 0x389   :  { %v2516_v49 = vsel %vm982_vm12, %v2510_v7, 0.0  ;;  %v2558_v46 = vmul.f32 %v5840_v14, %v5245_v62  ;;  %v5842_v7 = vld [vmem:[#allocation47_spill] sm:$0xff]  ;;  %v5858_v14 = vld [vmem:[#allocation26_spill] sm:$0xff] }
 0x38a   :  { %2517 = vadd.xlane.f32.xlu0 %v2516_v49 }
 0x3a0   :  { %2527 = vbcast.lane.b32.xlu0 %v5157_v6, 256 }
 0x3a4   :  { %2539 = vbcast.lane.b32.xlu0 %v5157_v6, 280  ;;  %v5260_v6 = vpop.permute.xlu1 %2535 }
 0x3a5   :  { %v2547_v42 = vmul.f32 %v5831_v10, %v5260_v6  ;;  %v2551_v48 = vmul.f32 %v5835_v29, %v5260_v6  ;;  %v2555_v35 = vmul.f32 %v5839_v33, %v5260_v6  ;;  %v5848_v10 = vld [vmem:[#allocation53_spill] sm:$0xff]  ;;  %v5857_v33 = vld [vmem:[#allocation24_spill] sm:$0xff] }
 0x3a6   :  { %v5853_v29 = vld [vmem:[#allocation17_spill] sm:$0xff] }
 0x3a8   :  { %2677 = vperm.xlu0 %3239, %v2546_v30   ;;  %v2559_v30 = vmul.f32 %v5843_v13, %v5260_v6  ;;  %v5861_v13 = vld [vmem:[#allocation27_spill] sm:$0xff] }
 0x413   :  { %v2518_v47 = vpop.xlane.xlu0 %2517 }
 0x414   :  { %v2520_v20 = vmul.f32 %v5251_v26, %v2518_v47  ;;  %v5844_v47 = vld [vmem:[#allocation49_spill] sm:$0xff] }
 0x416   :  { %v3202_v17 = vrot.slane %v2520_v20, %v5802_v4  ;;  %v2562_v20 = vmul.f32 %v5844_v47, %v5245_v62  ;;  %v5862_v47 = vld [vmem:[#allocation16_spill] sm:$0xff] }
 0x417   :  { %v5253_v34 = vpop.permute.xlu0 %2527 }
 0x418   :  { %v2545_v63 = vmul.f32 %v5829_v25, %v5253_v34  ;;  %v2549_v9 = vmul.f32 %v5833_v8, %v5253_v34  ;;  %v3203_v51 = vsel %vm658_vm2, %v3202_v17, %v3198_v19  ;;  %v2553_v1 = vmul.f32 %v5837_v53, %v5253_v34  ;;  %v5845_v25 = vld [vmem:[#allocation12_spill] sm:$0xff]  ;;  %v5849_v19 = vld [vmem:[#allocation14_spill] sm:$0xff] }
 0x419   :  { %3206 = vst.msk [vmem:[#allocation2] sm:$0x1] %vm3205_vm13, %v3203_v51  ;;  %v2557_v61 = vmul.f32 %v5841_v18, %v5253_v34  ;;  %v2565_v45 = vmul.f32 %v5849_v19, %v5253_v34  ;;  %v5855_v53 = vld [vmem:[#allocation60_spill] sm:$0xff] }
 0x41a   :  { %2674 = vperm.xlu1 %3240, %v2545_v63   ;;  %v2561_v63 = vmul.f32 %v5845_v25, %v5253_v34  ;;  %v5859_v18 = vld [vmem:[#allocation20_spill] sm:$0xff]  ;;  %v5863_v25 = vld [vmem:[#allocation30_spill] sm:$0xff] }
 0x41b   :  { %v5264_v39 = vpop.permute.xlu0 %2539  ;;  %v5867_v19 = vld [vmem:[#allocation28_spill] sm:$0xff] }
 0x41c   :  { %v2548_v54 = vmul.f32 %v5830_v36, %v5264_v39  ;;  %v2552_v0 = vmul.f32 %v5834_v2, %v5264_v39  ;;  %v2556_v37 = vmul.f32 %v5838_v41, %v5264_v39  ;;  %v2560_v49 = vmul.f32 %v5842_v7, %v5264_v39  ;;  %v5847_v36 = vld [vmem:[#allocation13_spill] sm:$0xff]  ;;  %v5852_v2 = vld [vmem:[#allocation55_spill] sm:$0xff]  ;;  %v5856_v41 = vld [vmem:[#allocation58_spill] sm:$0xff] }
 0x41d   :  { %v2564_v17 = vmul.f32 %v5846_v59, %v5264_v39  ;;  %v5860_v7 = vld [vmem:[#allocation22_spill] sm:$0xff]  ;;  %v5864_v59 = vld [vmem:[#allocation29_spill] sm:$0xff] }
 0x41e   :  { %2683 = vperm.xlu0 %3239, %v2548_v54   ;;  %2680 = vperm.xlu1 %3240, %v2547_v42   ;;  %v2563_v54 = vmul.f32 %v5847_v36, %v5260_v6  ;;  %v2566_v42 = vmul.f32 %v5848_v10, %v5245_v62  ;;  %v5865_v36 = vld [vmem:[#allocation18_spill] sm:$0xff]  ;;  %v5866_v10 = vld [vmem:[#allocation35_spill] sm:$0xff] }
 0x422   :  { %2689 = vperm.xlu0 %3239, %v2550_v43   ;;  %2686 = vperm.xlu1 %3240, %v2549_v9   ;;  %v5850_v43 = vld [vmem:[#allocation54_spill] sm:$0xff]  ;;  %v5851_v9 = vld [vmem:[#allocation15_spill] sm:$0xff] }
 0x423   :  { %v2568_v8 = vmul.f32 %v5850_v43, %v5264_v39  ;;  %v2567_v51 = vmul.f32 %v5851_v9, %v5260_v6  ;;  %v5868_v43 = vld [vmem:[#allocation19_spill] sm:$0xff] }
 0x424   :  { %v5869_v9 = vld [vmem:[#allocation23_spill] sm:$0xff] }
 0x426   :  { %2695 = vperm.xlu0 %3239, %v2552_v0   ;;  %2692 = vperm.xlu1 %3240, %v2551_v48   ;;  %v2570_v0 = vmul.f32 %v5852_v2, %v5245_v62  ;;  %v2569_v48 = vmul.f32 %v5853_v29, %v5253_v34  ;;  %v2590_v2 = vmul.f32 %v4549_v60, %v5245_v62 }
 0x427   :  { %v2595_v60 = vmul.f32 %v5821_v32, %v5260_v6  ;;  %v2602_v32 = vmul.f32 %v4604_v3, %v5245_v62  ;;  %v2607_v3 = vmul.f32 %v5827_v44, %v5260_v6 }
 0x42a   :  { %2701 = vperm.xlu0 %3239, %v2554_v23   ;;  %2698 = vperm.xlu1 %3240, %v2553_v1   ;;  %v2572_v23 = vmul.f32 %v5854_v31, %v5264_v39  ;;  %v2571_v1 = vmul.f32 %v5855_v53, %v5260_v6  ;;  %v5871_v31 = vld [vmem:[#allocation31_spill] sm:$0xff]  ;;  %v2594_v53 = vmul.f32 %v4569_v56, %v5245_v62 }
 0x42b   :  { %v2599_v56 = vmul.f32 %v5823_v16, %v5260_v6  ;;  %v2605_v16 = vmul.f32 %v5826_v15, %v5253_v34 }
 0x42e   :  { %2707 = vperm.xlu0 %3239, %v2556_v37   ;;  %2704 = vperm.xlu1 %3240, %v2555_v35   ;;  %v2574_v37 = vmul.f32 %v5856_v41, %v5245_v62  ;;  %v2573_v35 = vmul.f32 %v5857_v33, %v5253_v34  ;;  %v5872_v41 = vld [vmem:[#allocation33_spill] sm:$0xff]  ;;  %v2597_v33 = vmul.f32 %v5822_v21, %v5253_v34 }
 0x42f   :  { %v2600_v21 = vmul.f32 %v4597_v58, %v5264_v39  ;;  %v2608_v58 = vmul.f32 %v5816_v50, %v5264_v39 }
 0x432   :  { %2713 = vperm.xlu0 %3239, %v2558_v46   ;;  %2710 = vperm.xlu1 %3240, %v2557_v61   ;;  %v2577_v46 = vmul.f32 %v5858_v14, %v5253_v34  ;;  %v2575_v61 = vmul.f32 %v5859_v18, %v5260_v6 }
 0x436   :  { %2719 = vperm.xlu0 %3239, %v2560_v49   ;;  %2716 = vperm.xlu1 %3240, %v2559_v30   ;;  %v2581_v49 = vmul.f32 %v5860_v7, %v5253_v34  ;;  %v2578_v30 = vmul.f32 %v5861_v13, %v5245_v62 }
 0x43a   :  { %2725 = vperm.xlu0 %3239, %v2562_v20   ;;  %2722 = vperm.xlu1 %3240, %v2561_v63   ;;  %v2579_v20 = vmul.f32 %v5862_v47, %v5260_v6  ;;  %v2582_v63 = vmul.f32 %v5863_v25, %v5245_v62 }
 0x43e   :  { %2731 = vperm.xlu0 %3239, %v2564_v17   ;;  %2728 = vperm.xlu1 %3240, %v2563_v54   ;;  %v2585_v17 = vmul.f32 %v5864_v59, %v5253_v34  ;;  %v2583_v54 = vmul.f32 %v5865_v36, %v5260_v6 }
 0x442   :  { %2737 = vperm.xlu0 %3239, %v2566_v42   ;;  %2734 = vperm.xlu1 %3240, %v2565_v45   ;;  %v2580_v42 = vmul.f32 %v5866_v10, %v5264_v39  ;;  %v2586_v45 = vmul.f32 %v5867_v19, %v5245_v62 }
 0x446   :  { %2743 = vperm.xlu0 %3239, %v2568_v8   ;;  %2740 = vperm.xlu1 %3240, %v2567_v51   ;;  %v2587_v8 = vmul.f32 %v5868_v43, %v5260_v6  ;;  %v2584_v51 = vmul.f32 %v5869_v9, %v5264_v39 }
 0x44a   :  { %2749 = vperm.xlu0 %3239, %v2570_v0   ;;  %2746 = vperm.xlu1 %3240, %v2569_v48   ;;  %v5870_v0 = vld [vmem:[#allocation25_spill] sm:$0xff]  ;;  %v2591_v48 = vmul.f32 %v5818_v52, %v5260_v6  ;;  %v2598_v52 = vmul.f32 %v4589_v27, %v5245_v62  ;;  %v2603_v27 = vmul.f32 %v5825_v40, %v5260_v6  ;;  %v5873_v40 = vld [vmem:[#allocation59_spill] sm:$0xff] }
 0x44b   :  { %v2589_v29 = vmul.f32 %v5870_v0, %v5253_v34  ;;  %v2576_v14 = vmul.f32 %v5873_v40, %v5264_v39 }
 0x44e   :  { %2755 = vperm.xlu0 %3239, %v2572_v23   ;;  %2752 = vperm.xlu1 %3240, %v2571_v1   ;;  %v2588_v23 = vmul.f32 %v5871_v31, %v5264_v39  ;;  %v2593_v1 = vmul.f32 %v5820_v38, %v5253_v34  ;;  %v2596_v38 = vmul.f32 %v4579_v55, %v5264_v39 }
 0x44f   :  { %v2606_v55 = vmul.f32 %v5807_v28, %v5245_v62  ;;  %v2678_v28 = vpop.permute.xlu0 %2677 }
 0x452   :  { %2761 = vperm.xlu0 %3239, %v2574_v37   ;;  %2758 = vperm.xlu1 %3240, %v2573_v35   ;;  %v2592_v37 = vmul.f32 %v5872_v41, %v5264_v39  ;;  %v2601_v35 = vmul.f32 %v5824_v11, %v5253_v34  ;;  %v2604_v11 = vmul.f32 %v4613_v12, %v5264_v39 }
 0x453   :  { %v2872_v34 = vrot.slane %v2678_v28, %v5802_v4 }
 0x456   :  { %2770 = vperm.xlu0 %3239, %v2577_v46   ;;  %2764 = vperm.xlu1 %3240, %v2575_v61  }
 0x45a   :  { %2782 = vperm.xlu0 %3239, %v2581_v49   ;;  %2773 = vperm.xlu1 %3240, %v2578_v30  }
 0x45e   :  { %2776 = vperm.xlu0 %3239, %v2579_v20   ;;  %2785 = vperm.xlu1 %3240, %v2582_v63  }
 0x462   :  { %2794 = vperm.xlu0 %3239, %v2585_v17   ;;  %2788 = vperm.xlu1 %3240, %v2583_v54  }
 0x466   :  { %2779 = vperm.xlu0 %3239, %v2580_v42   ;;  %2797 = vperm.xlu1 %3240, %v2586_v45  }
 0x46a   :  { %2800 = vperm.xlu0 %3239, %v2587_v8   ;;  %2791 = vperm.xlu1 %3240, %v2584_v51  }
 0x46e   :  { %2809 = vperm.xlu0 %3239, %v2590_v2   ;;  %2806 = vperm.xlu1 %3240, %v2589_v29  }
 0x472   :  { %2812 = vperm.xlu0 %3239, %v2591_v48   ;;  %2803 = vperm.xlu1 %3240, %v2588_v23  }
 0x476   :  { %2821 = vperm.xlu0 %3239, %v2594_v53   ;;  %2818 = vperm.xlu1 %3240, %v2593_v1  }
 0x47a   :  { %2824 = vperm.xlu0 %3239, %v2595_v60   ;;  %2815 = vperm.xlu1 %3240, %v2592_v37  }
 0x47e   :  { %2833 = vperm.xlu0 %3239, %v2598_v52   ;;  %2830 = vperm.xlu1 %3240, %v2597_v33  }
 0x482   :  { %2836 = vperm.xlu0 %3239, %v2599_v56   ;;  %2827 = vperm.xlu1 %3240, %v2596_v38  }
 0x486   :  { %2845 = vperm.xlu0 %3239, %v2602_v32   ;;  %2842 = vperm.xlu1 %3240, %v2601_v35  }
 0x48a   :  { %2848 = vperm.xlu0 %3239, %v2603_v27   ;;  %2839 = vperm.xlu1 %3240, %v2600_v21  }
 0x48e   :  { %2857 = vperm.xlu0 %3239, %v2606_v55   ;;  %2854 = vperm.xlu1 %3240, %v2605_v16  }
 0x492   :  { %2860 = vperm.xlu0 %3239, %v2607_v3   ;;  %2851 = vperm.xlu1 %3240, %v2604_v11  }
 0x495   :  { %v2675_v62 = vpop.permute.xlu1 %2674 }
 0x496   :  { %2863 = vperm.xlu0 %3239, %v2608_v58   ;;  %2767 = vperm.xlu1 %3240, %v2576_v14   ;;  %v2868_v15 = vrot.slane %v2675_v62, %v5803_v57 }
 0x498   :  { %v2873_v18 = vsel %vm658_vm2, %v2872_v34, %v2868_v15 }
 0x499   :  { %v2684_v44 = vpop.permute.xlu0 %2683  ;;  %v2681_v6 = vpop.permute.xlu1 %2680 }
 0x49a   :  { %v2882_v12 = vrot.slane %v2684_v44, %v5806_v24  ;;  %v2877_v46 = vrot.slane %v2681_v6, %v5804_v22 }
 0x49c   :  { %v2878_v50 = vsel %vm665_vm3, %v2877_v46, %v2873_v18 }
 0x49d   :  { %v2883_v39 = vsel %vm672_vm4, %v2882_v12, %v2878_v50  ;;  %v2690_v61 = vpop.permute.xlu0 %2689  ;;  %v2687_v7 = vpop.permute.xlu1 %2686 }
 0x49e   :  { %v2891_v49 = vrot.slane %v2690_v61, %v5802_v4  ;;  %v2887_v13 = vrot.slane %v2687_v7, %v5803_v57 }
 0x4a0   :  { %v2892_v30 = vsel %vm658_vm2, %v2891_v49, %v2887_v13 }
 0x4a1   :  { %v2696_v47 = vpop.permute.xlu0 %2695  ;;  %v2693_v20 = vpop.permute.xlu1 %2692 }
 0x4a2   :  { %v2901_v25 = vrot.slane %v2696_v47, %v5806_v24  ;;  %v2896_v63 = vrot.slane %v2693_v20, %v5804_v22 }
 0x4a4   :  { %v2897_v59 = vsel %vm665_vm3, %v2896_v63, %v2892_v30 }
 0x4a5   :  { %v2902_v17 = vsel %vm672_vm4, %v2901_v25, %v2897_v59  ;;  %v2702_v36 = vpop.permute.xlu0 %2701  ;;  %v2699_v54 = vpop.permute.xlu1 %2698 }
 0x4a6   :  { %v3169_v10 = vsel %vm959_vm5, %v2902_v17, %v2883_v39  ;;  %v2910_v42 = vrot.slane %v2702_v36, %v5802_v4  ;;  %v2906_v19 = vrot.slane %v2699_v54, %v5803_v57 }
 0x4a8   :  { %v2911_v45 = vsel %vm658_vm2, %v2910_v42, %v2906_v19 }
 0x4a9   :  { %v2708_v43 = vpop.permute.xlu0 %2707  ;;  %v2705_v8 = vpop.permute.xlu1 %2704 }
 0x4aa   :  { %v2920_v9 = vrot.slane %v2708_v43, %v5806_v24  ;;  %v2915_v51 = vrot.slane %v2705_v8, %v5804_v22 }
 0x4ac   :  { %v2916_v2 = vsel %vm665_vm3, %v2915_v51, %v2911_v45 }
 0x4ad   :  { %v2921_v0 = vsel %vm672_vm4, %v2920_v9, %v2916_v2  ;;  %v2714_v29 = vpop.permute.xlu0 %2713  ;;  %v2711_v48 = vpop.permute.xlu1 %2710 }
 0x4ae   :  { %v3170_v31 = vsel %vm961_vm6, %v2921_v0, %v3169_v10  ;;  %v2929_v23 = vrot.slane %v2714_v29, %v5802_v4  ;;  %v2925_v53 = vrot.slane %v2711_v48, %v5803_v57 }
 0x4b0   :  { %v2930_v1 = vsel %vm658_vm2, %v2929_v23, %v2925_v53 }
 0x4b1   :  { %v2720_v60 = vpop.permute.xlu0 %2719  ;;  %v2717_v41 = vpop.permute.xlu1 %2716 }
 0x4b2   :  { %v2939_v37 = vrot.slane %v2720_v60, %v5806_v24  ;;  %v2934_v52 = vrot.slane %v2717_v41, %v5804_v22 }
 0x4b4   :  { %v2935_v33 = vsel %vm665_vm3, %v2934_v52, %v2930_v1 }
 0x4b5   :  { %v2940_v56 = vsel %vm672_vm4, %v2939_v37, %v2935_v33  ;;  %v2726_v38 = vpop.permute.xlu0 %2725  ;;  %v2723_v32 = vpop.permute.xlu1 %2722 }
 0x4b6   :  { %v3171_v35 = vsel %vm963_vm7, %v2940_v56, %v3170_v31  ;;  %v2948_v27 = vrot.slane %v2726_v38, %v5802_v4  ;;  %v2944_v21 = vrot.slane %v2723_v32, %v5803_v57 }
 0x4b8   :  { %v2949_v55 = vsel %vm658_vm2, %v2948_v27, %v2944_v21 }
 0x4b9   :  { %v2732_v16 = vpop.permute.xlu0 %2731  ;;  %v2729_v3 = vpop.permute.xlu1 %2728 }
 0x4ba   :  { %v2958_v11 = vrot.slane %v2732_v16, %v5806_v24  ;;  %v2953_v58 = vrot.slane %v2729_v3, %v5804_v22 }
 0x4bc   :  { %v2954_v40 = vsel %vm665_vm3, %v2953_v58, %v2949_v55 }
 0x4bd   :  { %v2959_v14 = vsel %vm672_vm4, %v2958_v11, %v2954_v40  ;;  %v2738_v28 = vpop.permute.xlu0 %2737  ;;  %v2735_v62 = vpop.permute.xlu1 %2734 }
 0x4be   :  { %v2967_v15 = vrot.slane %v2738_v28, %v5802_v4  ;;  %v2963_v34 = vrot.slane %v2735_v62, %v5803_v57  ;;  %v3172_v44 = vsel %vm965_vm8, %v2959_v14, %v3171_v35 }
 0x4c0   :  { %v2968_v6 = vsel %vm658_vm2, %v2967_v15, %v2963_v34 }
 0x4c1   :  { %v2744_v12 = vpop.permute.xlu0 %2743  ;;  %v2741_v46 = vpop.permute.xlu1 %2740 }
 0x4c2   :  { %v2977_v18 = vrot.slane %v2744_v12, %v5806_v24  ;;  %v2972_v50 = vrot.slane %v2741_v46, %v5804_v22 }
 0x4c4   :  { %v2973_v39 = vsel %vm665_vm3, %v2972_v50, %v2968_v6 }
 0x4c5   :  { %v2978_v61 = vsel %vm672_vm4, %v2977_v18, %v2973_v39  ;;  %v2750_v7 = vpop.permute.xlu0 %2749  ;;  %v2747_v49 = vpop.permute.xlu1 %2746 }
 0x4c6   :  { %v2986_v13 = vrot.slane %v2750_v7, %v5802_v4  ;;  %v2982_v30 = vrot.slane %v2747_v49, %v5803_v57  ;;  %v3173_v47 = vsel %vm967_vm9, %v2978_v61, %v3172_v44 }
 0x4c8   :  { %v2987_v20 = vsel %vm658_vm2, %v2986_v13, %v2982_v30 }
 0x4c9   :  { %v2756_v25 = vpop.permute.xlu0 %2755  ;;  %v2753_v63 = vpop.permute.xlu1 %2752 }
 0x4ca   :  { %v2996_v59 = vrot.slane %v2756_v25, %v5806_v24  ;;  %v2991_v17 = vrot.slane %v2753_v63, %v5804_v22 }
 0x4cc   :  { %v2992_v36 = vsel %vm665_vm3, %v2991_v17, %v2987_v20 }
 0x4cd   :  { %v2762_v54 = vpop.permute.xlu0 %2761  ;;  %v2759_v10 = vpop.permute.xlu1 %2758  ;;  %v2997_v42 = vsel %vm672_vm4, %v2996_v59, %v2992_v36 }
 0x4ce   :  { %v3005_v19 = vrot.slane %v2762_v54, %v5802_v4  ;;  %v3001_v45 = vrot.slane %v2759_v10, %v5803_v57  ;;  %v5451_v43 = vsel %vm969_vm10, %v2997_v42, %v3173_v47 }
 0x4d0   :  { %v5454_v8 = vsel %vm658_vm2, %v3005_v19, %v3001_v45 }
 0x4d1   :  { %v2771_v9 = vpop.permute.xlu0 %2770  ;;  %v5456_v51 = vpop.permute.xlu1 %2764 }
 0x4d2   :  { %v3020_v62 = vrot.slane %v2771_v9, %v5803_v57  ;;  %v3010_v47 = vrot.slane %v5456_v51, %v5804_v22 }
 0x4d5   :  { %v2783_v2 = vpop.permute.xlu0 %2782  ;;  %v2774_v0 = vpop.permute.xlu1 %2773 }
 0x4d6   :  { %v3024_v11 = vrot.slane %v2774_v0, %v5802_v4  ;;  %v3039_v15 = vrot.slane %v2783_v2, %v5803_v57 }
 0x4d8   :  { %v3025_v6 = vsel %vm658_vm2, %v3024_v11, %v3020_v62 }
 0x4d9   :  { %v2777_v29 = vpop.permute.xlu0 %2776  ;;  %v2786_v48 = vpop.permute.xlu1 %2785 }
 0x4da   :  { %v3029_v58 = vrot.slane %v2777_v29, %v5804_v22  ;;  %v3043_v40 = vrot.slane %v2786_v48, %v5802_v4 }
 0x4dc   :  { %v3030_v46 = vsel %vm665_vm3, %v3029_v58, %v3025_v6  ;;  %v3044_v18 = vsel %vm658_vm2, %v3043_v40, %v3039_v15 }
 0x4dd   :  { %v2795_v31 = vpop.permute.xlu0 %2794  ;;  %v2789_v23 = vpop.permute.xlu1 %2788 }
 0x4de   :  { %v3048_v34 = vrot.slane %v2789_v23, %v5804_v22  ;;  %v3058_v7 = vrot.slane %v2795_v31, %v5803_v57 }
 0x4e0   :  { %v3049_v20 = vsel %vm665_vm3, %v3048_v34, %v3044_v18 }
 0x4e1   :  { %v2780_v53 = vpop.permute.xlu0 %2779  ;;  %v2798_v1 = vpop.permute.xlu1 %2797 }
 0x4e2   :  { %v3034_v44 = vrot.slane %v2780_v53, %v5806_v24  ;;  %v3062_v12 = vrot.slane %v2798_v1, %v5802_v4 }
 0x4e4   :  { %v3035_v25 = vsel %vm672_vm4, %v3034_v44, %v3030_v46  ;;  %v3063_v63 = vsel %vm658_vm2, %v3062_v12, %v3058_v7 }
 0x4e5   :  { %v2801_v60 = vpop.permute.xlu0 %2800  ;;  %v2792_v41 = vpop.permute.xlu1 %2791 }
 0x4e6   :  { %v3067_v50 = vrot.slane %v2801_v60, %v5804_v22  ;;  %v3053_v49 = vrot.slane %v2792_v41, %v5806_v24 }
 0x4e8   :  { %v3068_v54 = vsel %vm665_vm3, %v3067_v50, %v3063_v63  ;;  %v3054_v51 = vsel %vm672_vm4, %v3053_v49, %v3049_v20  ;;  %v3011_v50 = vsel %vm665_vm3, %v3010_v47, %v5454_v8 }
 0x4e9   :  { %v2810_v37 = vpop.permute.xlu0 %2809  ;;  %v2807_v52 = vpop.permute.xlu1 %2806 }
 0x4ea   :  { %v3081_v13 = vrot.slane %v2810_v37, %v5802_v4  ;;  %v3077_v30 = vrot.slane %v2807_v52, %v5803_v57  ;;  %v3176_v52 = vsel %vm959_vm5, %v3054_v51, %v3035_v25 }
 0x4ec   :  { %v3082_v2 = vsel %vm658_vm2, %v3081_v13, %v3077_v30 }
 0x4ed   :  { %v2813_v33 = vpop.permute.xlu0 %2812  ;;  %v2804_v56 = vpop.permute.xlu1 %2803 }
 0x4ee   :  { %v3086_v59 = vrot.slane %v2813_v33, %v5804_v22  ;;  %v3072_v10 = vrot.slane %v2804_v56, %v5806_v24 }
 0x4f0   :  { %v3087_v1 = vsel %vm665_vm3, %v3086_v59, %v3082_v2  ;;  %v3073_v33 = vsel %vm672_vm4, %v3072_v10, %v3068_v54 }
 0x4f1   :  { %v2822_v38 = vpop.permute.xlu0 %2821  ;;  %v2819_v32 = vpop.permute.xlu1 %2818 }
 0x4f2   :  { %v3100_v17 = vrot.slane %v2822_v38, %v5802_v4  ;;  %v3096_v36 = vrot.slane %v2819_v32, %v5803_v57 }
 0x4f4   :  { %v3101_v60 = vsel %vm658_vm2, %v3100_v17, %v3096_v36 }
 0x4f5   :  { %v2825_v35 = vpop.permute.xlu0 %2824  ;;  %v2816_v27 = vpop.permute.xlu1 %2815 }
 0x4f6   :  { %v3105_v42 = vrot.slane %v2825_v35, %v5804_v22  ;;  %v3091_v19 = vrot.slane %v2816_v27, %v5806_v24 }
 0x4f8   :  { %v3106_v56 = vsel %vm665_vm3, %v3105_v42, %v3101_v60  ;;  %v3092_v38 = vsel %vm672_vm4, %v3091_v19, %v3087_v1 }
 0x4f9   :  { %v2834_v21 = vpop.permute.xlu0 %2833  ;;  %v2831_v55 = vpop.permute.xlu1 %2830 }
 0x4fa   :  { %v3119_v0 = vrot.slane %v2834_v21, %v5802_v4  ;;  %v3115_v29 = vrot.slane %v2831_v55, %v5803_v57 }
 0x4fc   :  { %v3120_v27 = vsel %vm658_vm2, %v3119_v0, %v3115_v29 }
 0x4fd   :  { %v2837_v16 = vpop.permute.xlu0 %2836  ;;  %v2828_v3 = vpop.permute.xlu1 %2827 }
 0x4fe   :  { %v3124_v48 = vrot.slane %v2837_v16, %v5804_v22  ;;  %v3110_v31 = vrot.slane %v2828_v3, %v5806_v24 }
 0x500   :  { %v3125_v3 = vsel %vm665_vm3, %v3124_v48, %v3120_v27  ;;  %v3111_v11 = vsel %vm672_vm4, %v3110_v31, %v3106_v56 }
 0x501   :  { %v2846_v14 = vpop.permute.xlu0 %2845  ;;  %v2843_v28 = vpop.permute.xlu1 %2842 }
 0x502   :  { %v3138_v23 = vrot.slane %v2846_v14, %v5802_v4  ;;  %v3134_v53 = vrot.slane %v2843_v28, %v5803_v57  ;;  %v3177_v14 = vsel %vm961_vm6, %v3073_v33, %v3176_v52 }
 0x503   :  { %v3178_v15 = vsel %vm963_vm7, %v3092_v38, %v3177_v14 }
 0x504   :  { %v3139_v58 = vsel %vm658_vm2, %v3138_v23, %v3134_v53  ;;  %v3179_v12 = vsel %vm965_vm8, %v3111_v11, %v3178_v15 }
 0x505   :  { %v2849_v39 = vpop.permute.xlu0 %2848  ;;  %v2840_v61 = vpop.permute.xlu1 %2839 }
 0x506   :  { %v3143_v41 = vrot.slane %v2849_v39, %v5804_v22  ;;  %v3129_v37 = vrot.slane %v2840_v61, %v5806_v24 }
 0x508   :  { %v3144_v28 = vsel %vm665_vm3, %v3143_v41, %v3139_v58  ;;  %v3130_v62 = vsel %vm672_vm4, %v3129_v37, %v3125_v3 }
 0x509   :  { %v2858_v45 = vpop.permute.xlu0 %2857  ;;  %v2855_v9 = vpop.permute.xlu1 %2854  ;;  %v3180_v61 = vsel %vm967_vm9, %v3130_v62, %v3179_v12 }
 0x50a   :  { %v3157_v21 = vrot.slane %v2858_v45, %v5802_v4  ;;  %v3153_v55 = vrot.slane %v2855_v9, %v5803_v57 }
 0x50c   :  { %v3158_v46 = vsel %vm658_vm2, %v3157_v21, %v3153_v55 }
 0x50d   :  { %v2861_v32 = vpop.permute.xlu0 %2860  ;;  %v2852_v35 = vpop.permute.xlu1 %2851 }
 0x50e   :  { %v3148_v16 = vrot.slane %v2852_v35, %v5806_v24  ;;  %v3162_v40 = vrot.slane %v2861_v32, %v5804_v22 }
 0x510   :  { %v3149_v34 = vsel %vm672_vm4, %v3148_v16, %v3144_v28  ;;  %v3163_v39 = vsel %vm665_vm3, %v3162_v40, %v3158_v46 }
 0x511   :  { %v2864_v44 = vpop.permute.xlu0 %2863  ;;  %v2768_v6 = vpop.permute.xlu1 %2767  ;;  %v3181_v49 = vsel %vm969_vm10, %v3149_v34, %v3180_v61 }
 0x512   :  { %v3167_v18 = vrot.slane %v2864_v44, %v5806_v24  ;;  %v3015_v22 = vrot.slane %v2768_v6, %v5806_v24 }
 0x514   :  { %v3168_v7 = vsel %vm672_vm4, %v3167_v18, %v3163_v39  ;;  %v3016_v13 = vsel %vm672_vm4, %v3015_v22, %v3011_v50 }
 0x515   :  { %v3182_v30 = vsel %vm971_vm11, %v3168_v7, %v3181_v49  ;;  %v3175_v20 = vsel %vm971_vm11, %v3016_v13, %v5451_v43 }
 0x516   :  { %v3188_v24 = vsel %vm982_vm12, %v3182_v30, 0.0  ;;  %v3185_v25 = vsel %vm982_vm12, %v3175_v20, 0.0 }
 0x517   :  { %3189 = vadd.xlane.f32.xlu0 %v3188_v24  ;;  %3186 = vadd.xlane.f32.xlu1 %v3185_v25 }
 0x5a0   :  { %v3190_v8 = vpop.xlane.xlu0 %3189  ;;  %v3187_v47 = vpop.xlane.xlu1 %3186 }
 0x5a1   :  { %v3192_v63 = vmul.f32 %v5251_v26, %v3190_v8  ;;  %v3191_v59 = vmul.f32 %v5258_v5, %v3187_v47 }
 0x5a3   :  { %v3216_v17 = vrot.slane %v3192_v63, %v5802_v4  ;;  %v3212_v36 = vrot.slane %v3191_v59, %v5803_v57 }
 0x5a5   :  { %v3217_v43 = vsel %vm658_vm2, %v3216_v17, %v3212_v36 }
 0x5a6   :  { %3219 = vst.msk [vmem:[#allocation2 + $0x1] sm:$0x1] %vm3205_vm13, %v3217_v43 }
 0x5a7   :  { %3386 = shalt.err (!%p3383_p4)
}
 0x5a8   :  { %3229 = dma.vmem_to_hbm [thread:$0]  %s3227_s8, 32, %s5543_s3, [#allocation3]  }
 0x5a9   :  { %3395 = dma.done.wait [#allocation3], 32  }
 0x5aa   :  { %3396 = vsyncadd [#allocation3], 4294967264 }
 0x5ab   :  { %3233 = vsyncpa [#allocation3], 1 }

</bundles_post_ra>
